<compile_context>
chip_gen: v7x
topology: tpu7x:2x2x1
jax: 0.10.0
libtpu: 0.0.40
codegen_flags: <defaults>
</compile_context>

<pallas_src>
import jax
import jax.numpy as jnp
from jax.experimental import pallas as pl
from jax.experimental.pallas import tpu as pltpu

LATENT_DIM = 9
INPUT_DIM = 360
OUT_PAD = 384          # round_up(INPUT_DIM + LATENT_DIM, 128): packed recon+latent width

ENC_DIMS = [INPUT_DIM, 256, 128, 64, LATENT_DIM]
DEC_DIMS = [LATENT_DIM, 64, 128, 256, INPUT_DIM]


def _round_up(n, m):
    return ((n + m - 1) // m) * m


def _leaky_relu(h, negative_slope=0.1):
    return jnp.where(h > 0, h, negative_slope * h)


# --------------------------------------------------------------------------- #
# Kernel
# --------------------------------------------------------------------------- #
def autoencoder_kernel(x_ref,
                       ew1, eb1, ew2, eb2, ew3, eb3, ew4, eb4,
                       dw1, db1, dw2, db2, dw3, db3, dw4, db4,
                       out_ref):
    """One batch tile: 8 bf16 matmuls (f32 accumulation) + 6 LeakyReLU(0.1).

    Output is a single (tb, 384) f32 slab: columns [0, 360) hold recon and
    columns [360, 369) hold the latent (rest are zeros).
    """

    def layer(h_bf16, w_ref, b_ref, act):
        # bf16 x bf16 -> f32 accumulate on the MXU; bias + activation in f32.
        y = jnp.dot(h_bf16, w_ref[...], preferred_element_type=jnp.float32)
        y = y + b_ref[...]
        if act:
            y = _leaky_relu(y)
        return y

    # ---- encoder ----
    h = x_ref[...].astype(jnp.bfloat16)                       # (tb, 360) bf16
    h = layer(h, ew1, eb1, act=True).astype(jnp.bfloat16)     # (tb, 256)
    h = layer(h, ew2, eb2, act=True).astype(jnp.bfloat16)     # (tb, 128)
    h = layer(h, ew3, eb3, act=True).astype(jnp.bfloat16)     # (tb, 64)
    # ew4/eb4 are pre-placed into a 384-wide slab: latent lives in cols 360..368,
    # every other column is exactly zero.
    latent_slab = layer(h, ew4, eb4, act=False)               # f32 (tb, 384)

    # ---- decoder ----  (dw1 is pre-placed: rows 360..368 are the real 9x64 weight)
    h = layer(latent_slab.astype(jnp.bfloat16), dw1, db1, act=True).astype(jnp.bfloat16)
    h = layer(h, dw2, db2, act=True).astype(jnp.bfloat16)     # (tb, 128)
    h = layer(h, dw3, db3, act=True).astype(jnp.bfloat16)     # (tb, 256)
    recon = layer(h, dw4, db4, act=False)                     # f32 (tb, 384), cols 360..383 are 0

    # Pack recon (cols 0..359) and latent (cols 360..368) into one store.
    out_ref[...] = (recon + latent_slab).astype(out_ref.dtype)


# --------------------------------------------------------------------------- #
# Parameter preparation (bf16 weights, zero-placed padding for packed latent)
# --------------------------------------------------------------------------- #
def prepare_params(params):
    """params: flat [w, b, ...] with w=(in, out) f32, b=(1, out) f32.

    Returns kernel params: bf16 weights, f32 biases. Encoder L4 / decoder L1 /
    decoder L4 are zero-padded/placed so the latent occupies columns
    [INPUT_DIM, INPUT_DIM+LATENT_DIM) of a 384-wide slab. Padding is zeros, so
    the math is identical to the unpadded network.
    """
    ws = params[0::2]
    bs = params[1::2]
    out = []
    lat_lo, lat_hi = INPUT_DIM, INPUT_DIM + LATENT_DIM
    for i, (w, b) in enumerate(zip(ws, bs)):
        w = jnp.asarray(w, jnp.float32)
        b = jnp.asarray(b, jnp.float32)
        if i == 3:   # encoder L4: (64, 9) -> (64, 384), latent at cols 360..368
            w = jnp.zeros((w.shape[0], OUT_PAD), jnp.float32).at[:, lat_lo:lat_hi].set(w)
            b = jnp.zeros((1, OUT_PAD), jnp.float32).at[:, lat_lo:lat_hi].set(b)
        elif i == 4:  # decoder L1: (9, 64) -> (384, 64), real rows at 360..368
            w = jnp.zeros((OUT_PAD, w.shape[1]), jnp.float32).at[lat_lo:lat_hi, :].set(w)
        elif i == 7:  # decoder L4: (256, 360) -> (256, 384), zero-padded columns
            w = jnp.pad(w, ((0, 0), (0, OUT_PAD - INPUT_DIM)))
            b = jnp.pad(b, ((0, 0), (0, OUT_PAD - INPUT_DIM)))
        out.append(w.astype(jnp.bfloat16))
        out.append(b)                   # biases stay f32
    return out


# --------------------------------------------------------------------------- #
# Tile selection
# --------------------------------------------------------------------------- #
def _pick_tile(batch, block_rows):
    """Pick a batch tile: multiple of 8, capped by block_rows / batch, and on
    large batches shrunk so the grid has >=4 tiles (2 per v7x TensorCore)."""
    tb = max(8, min(_round_up(block_rows, 8), _round_up(batch, 8)))
    while tb >= 1024 and pl.cdiv(batch, tb) < 4:
        tb //= 2
    return _round_up(tb, 8)


# --------------------------------------------------------------------------- #
# Wrapper
# --------------------------------------------------------------------------- #
def weather_autoencoder_forward(x, params, *, block_rows=2048):
    """x: (B, INPUT_DIM) f32. params: flat [w, b, ...] with w=(in,out), b=(1,out).

    Returns (recon (B, INPUT_DIM) f32, latent (B, LATENT_DIM) f32).
    block_rows: max batch tile; 2048 is safe on v7x (64 MiB VMEM), can be raised
    to 4096 on v5e/v6e (128 MiB VMEM).
    """
    B = x.shape[0]
    assert x.shape[1] == INPUT_DIM
    x = x.astype(jnp.float32)

    tb = _pick_tile(B, block_rows)
    grid = (pl.cdiv(B, tb),)            # ragged last block handled by Pallas

    kparams = prepare_params(params)

    x_spec = pl.BlockSpec((tb, INPUT_DIM), lambda i: (i, 0))
    weight_specs = [pl.BlockSpec(p.shape, lambda i: (0, 0)) for p in kparams]
    out_spec = pl.BlockSpec((tb, OUT_PAD), lambda i: (i, 0))

    dims = list(zip(ENC_DIMS[:-1], ENC_DIMS[1:])) + list(zip(DEC_DIMS[:-1], DEC_DIMS[1:]))
    flops = 2 * B * sum(fi * fo for fi, fo in dims)
    bytes_accessed = (B * INPUT_DIM * 4                 # f32 input
                      + B * OUT_PAD * 4                 # f32 packed output
                      + sum(int(p.size) * p.dtype.itemsize for p in kparams))
    cost = pl.CostEstimate(flops=int(flops), transcendentals=0,
                           bytes_accessed=int(bytes_accessed))

    packed = pl.pallas_call(
        autoencoder_kernel,
        out_shape=jax.ShapeDtypeStruct((B, OUT_PAD), jnp.float32),
        grid_spec=pltpu.PrefetchScalarGridSpec(
            num_scalar_prefetch=0,
            grid=grid,
            in_specs=[x_spec] + weight_specs,
            out_specs=out_spec,
        ),
        compiler_params=pltpu.CompilerParams(
            dimension_semantics=("parallel",),
            vmem_limit_bytes=48 * 1024 * 1024,
        ),
        cost_estimate=cost,
    )(x, *kparams)

    recon = packed[:, :INPUT_DIM]
    latent = packed[:, INPUT_DIM:INPUT_DIM + LATENT_DIM]
    return recon, latent


# --------------------------------------------------------------------------- #
# Init + reference
# --------------------------------------------------------------------------- #
def init_params(key):
    """Deterministic init mirroring nn.Linear default (uniform +/- 1/sqrt(fan_in))."""
    params = []
    dims = list(zip(ENC_DIMS[:-1], ENC_DIMS[1:])) + list(zip(DEC_DIMS[:-1], DEC_DIMS[1:]))
    for (fan_in, fan_out) in dims:
        key, kw, kb = jax.random.split(key, 3)
        bound = 1.0 / jnp.sqrt(jnp.float32(fan_in))
        # Stored already transposed: (in, out)
        w = jax.random.uniform(kw, (fan_in, fan_out), jnp.float32, -bound, bound)
        b = jax.random.uniform(kb, (1, fan_out), jnp.float32, -bound, bound)
        params.append(w)
        params.append(b)
    return params


def reference_forward(x, params):
    """Plain-JAX reference mirroring the kernel's mixed-precision path."""
    ws = params[0::2]
    bs = params[1::2]

    def lay(h, w, b, act):
        y = jnp.dot(h.astype(jnp.bfloat16), w.astype(jnp.bfloat16),
                    preferred_element_type=jnp.float32) + b
        return _leaky_relu(y) if act else y

    h = x
    for i in range(3):
        h = lay(h, ws[i], bs[i], act=True)
    latent = lay(h, ws[3], bs[3], act=False)
    h = latent
    for i in range(4, 7):
        h = lay(h, ws[i], bs[i], act=True)
    recon = lay(h, ws[7], bs[7], act=False)
    return recon, latent


# --------------------------------------------------------------------------- #
# Test harness
# --------------------------------------------------------------------------- #
if __name__ == "__main__":
    key = jax.random.PRNGKey(0)
    key, kx1, kx2 = jax.random.split(key, 3)
    params = init_params(key)

    # Small case (single tile).
    B1 = 8
    x1 = jax.random.normal(kx1, (B1, INPUT_DIM), dtype=jnp.float32)
    recon1, latent1 = weather_autoencoder_forward(x1, params)
    jax.block_until_ready((recon1, latent1))
    recon1_ref, latent1_ref = reference_forward(x1, params)
    assert recon1.shape == (B1, INPUT_DIM) and latent1.shape == (B1, LATENT_DIM)
    assert jnp.allclose(recon1, recon1_ref, atol=2e-2, rtol=2e-2)
    assert jnp.allclose(latent1, latent1_ref, atol=2e-2, rtol=2e-2)

    # Multi-tile case with a ragged tail (grid > 1, padding-free ragged grid).
    B2 = 260
    x2 = jax.random.normal(kx2, (B2, INPUT_DIM), dtype=jnp.float32)
    recon2, latent2 = weather_autoencoder_forward(x2, params, block_rows=128)
    jax.block_until_ready((recon2, latent2))
    recon2_ref, latent2_ref = reference_forward(x2, params)
    assert recon2.shape == (B2, INPUT_DIM) and latent2.shape == (B2, LATENT_DIM)
    assert jnp.allclose(recon2, recon2_ref, atol=2e-2, rtol=2e-2)
    assert jnp.allclose(latent2, latent2_ref, atol=2e-2, rtol=2e-2)

    print("KERNEL_OK")
</pallas_src>

<mosaic_0001>
module attributes {stable_mosaic.version = 11 : i64} {
  func.func @autoencoder_kernel(%arg0: i32, %arg1: memref<8x360xf32, #tpu.memory_space<vmem>>, %arg2: memref<360x256xbf16, #tpu.memory_space<vmem>>, %arg3: memref<1x256xf32, #tpu.memory_space<vmem>>, %arg4: memref<256x128xbf16, #tpu.memory_space<vmem>>, %arg5: memref<1x128xf32, #tpu.memory_space<vmem>>, %arg6: memref<128x64xbf16, #tpu.memory_space<vmem>>, %arg7: memref<1x64xf32, #tpu.memory_space<vmem>>, %arg8: memref<64x384xbf16, #tpu.memory_space<vmem>>, %arg9: memref<1x384xf32, #tpu.memory_space<vmem>>, %arg10: memref<384x64xbf16, #tpu.memory_space<vmem>>, %arg11: memref<1x64xf32, #tpu.memory_space<vmem>>, %arg12: memref<64x128xbf16, #tpu.memory_space<vmem>>, %arg13: memref<1x128xf32, #tpu.memory_space<vmem>>, %arg14: memref<128x256xbf16, #tpu.memory_space<vmem>>, %arg15: memref<1x256xf32, #tpu.memory_space<vmem>>, %arg16: memref<256x384xbf16, #tpu.memory_space<vmem>>, %arg17: memref<1x384xf32, #tpu.memory_space<vmem>>, %arg18: memref<8x384xf32, #tpu.memory_space<vmem>>) attributes {dimension_semantics = [#tpu.dimension_semantics<parallel>], iteration_bounds = array<i64: 1>, scalar_prefetch = 0 : i64, scratch_operands = 0 : i64, tpu.core_type = #tpu.core_type<tc>, window_params = [{transform_indices = @transform_0, window_bounds = array<i64: 8, 360>}, {pipeline_mode = #tpu.pipeline_mode<synchronous>, transform_indices = @transform_1, window_bounds = array<i64: 360, 256>}, {pipeline_mode = #tpu.pipeline_mode<synchronous>, transform_indices = @transform_2, window_bounds = array<i64: 1, 256>}, {pipeline_mode = #tpu.pipeline_mode<synchronous>, transform_indices = @transform_3, window_bounds = array<i64: 256, 128>}, {pipeline_mode = #tpu.pipeline_mode<synchronous>, transform_indices = @transform_4, window_bounds = array<i64: 1, 128>}, {pipeline_mode = #tpu.pipeline_mode<synchronous>, transform_indices = @transform_5, window_bounds = array<i64: 128, 64>}, {pipeline_mode = #tpu.pipeline_mode<synchronous>, transform_indices = @transform_6, window_bounds = array<i64: 1, 64>}, {pipeline_mode = #tpu.pipeline_mode<synchronous>, transform_indices = @transform_7, window_bounds = array<i64: 64, 384>}, {pipeline_mode = #tpu.pipeline_mode<synchronous>, transform_indices = @transform_8, window_bounds = array<i64: 1, 384>}, {pipeline_mode = #tpu.pipeline_mode<synchronous>, transform_indices = @transform_9, window_bounds = array<i64: 384, 64>}, {pipeline_mode = #tpu.pipeline_mode<synchronous>, transform_indices = @transform_10, window_bounds = array<i64: 1, 64>}, {pipeline_mode = #tpu.pipeline_mode<synchronous>, transform_indices = @transform_11, window_bounds = array<i64: 64, 128>}, {pipeline_mode = #tpu.pipeline_mode<synchronous>, transform_indices = @transform_12, window_bounds = array<i64: 1, 128>}, {pipeline_mode = #tpu.pipeline_mode<synchronous>, transform_indices = @transform_13, window_bounds = array<i64: 128, 256>}, {pipeline_mode = #tpu.pipeline_mode<synchronous>, transform_indices = @transform_14, window_bounds = array<i64: 1, 256>}, {pipeline_mode = #tpu.pipeline_mode<synchronous>, transform_indices = @transform_15, window_bounds = array<i64: 256, 384>}, {pipeline_mode = #tpu.pipeline_mode<synchronous>, transform_indices = @transform_16, window_bounds = array<i64: 1, 384>}, {transform_indices = @transform_17, window_bounds = array<i64: 8, 384>}]} {
    %c0 = arith.constant 0 : index
    %c0_0 = arith.constant 0 : index
    %0 = vector.load %arg1[%c0, %c0_0] : memref<8x360xf32, #tpu.memory_space<vmem>>, vector<8x360xf32>
    %1 = arith.truncf %0 : vector<8x360xf32> to vector<8x360xbf16>
    %c0_1 = arith.constant 0 : index
    %c0_2 = arith.constant 0 : index
    %2 = vector.load %arg2[%c0_1, %c0_2] : memref<360x256xbf16, #tpu.memory_space<vmem>>, vector<360x256xbf16>
    %cst = arith.constant dense<0.000000e+00> : vector<8x256xf32>
    %3 = tpu.matmul %1, %2, %cst {dimension_numbers = #tpu.dot_dimension_numbers<[1], [0], [0], [1], [0, 0, 1, 1], [], []>} : vector<8x360xbf16>, vector<360x256xbf16>, vector<8x256xf32> -> vector<8x256xf32>
    %c0_3 = arith.constant 0 : index
    %c0_4 = arith.constant 0 : index
    %4 = vector.load %arg3[%c0_3, %c0_4] : memref<1x256xf32, #tpu.memory_space<vmem>>, vector<1x256xf32>
    %5 = vector.broadcast %4 : vector<1x256xf32> to vector<8x256xf32>
    %6 = arith.addf %3, %5 : vector<8x256xf32>
    %cst_5 = arith.constant 0.000000e+00 : f32
    %7 = vector.broadcast %cst_5 : f32 to vector<8x256xf32>
    %8 = arith.cmpf ogt, %6, %7 : vector<8x256xf32>
    %cst_6 = arith.constant 1.000000e-01 : f32
    %9 = vector.broadcast %cst_6 : f32 to vector<8x256xf32>
    %10 = arith.mulf %9, %6 : vector<8x256xf32>
    %11 = arith.select %8, %6, %10 : vector<8x256xi1>, vector<8x256xf32>
    %12 = arith.truncf %11 : vector<8x256xf32> to vector<8x256xbf16>
    %c0_7 = arith.constant 0 : index
    %c0_8 = arith.constant 0 : index
    %13 = vector.load %arg4[%c0_7, %c0_8] : memref<256x128xbf16, #tpu.memory_space<vmem>>, vector<256x128xbf16>
    %cst_9 = arith.constant dense<0.000000e+00> : vector<8x128xf32>
    %14 = tpu.matmul %12, %13, %cst_9 {dimension_numbers = #tpu.dot_dimension_numbers<[1], [0], [0], [1], [0, 0, 1, 1], [], []>} : vector<8x256xbf16>, vector<256x128xbf16>, vector<8x128xf32> -> vector<8x128xf32>
    %c0_10 = arith.constant 0 : index
    %c0_11 = arith.constant 0 : index
    %15 = vector.load %arg5[%c0_10, %c0_11] : memref<1x128xf32, #tpu.memory_space<vmem>>, vector<1x128xf32>
    %16 = vector.broadcast %15 : vector<1x128xf32> to vector<8x128xf32>
    %17 = arith.addf %14, %16 : vector<8x128xf32>
    %cst_12 = arith.constant 0.000000e+00 : f32
    %18 = vector.broadcast %cst_12 : f32 to vector<8x128xf32>
    %19 = arith.cmpf ogt, %17, %18 : vector<8x128xf32>
    %cst_13 = arith.constant 1.000000e-01 : f32
    %20 = vector.broadcast %cst_13 : f32 to vector<8x128xf32>
    %21 = arith.mulf %20, %17 : vector<8x128xf32>
    %22 = arith.select %19, %17, %21 : vector<8x128xi1>, vector<8x128xf32>
    %23 = arith.truncf %22 : vector<8x128xf32> to vector<8x128xbf16>
    %c0_14 = arith.constant 0 : index
    %c0_15 = arith.constant 0 : index
    %24 = vector.load %arg6[%c0_14, %c0_15] : memref<128x64xbf16, #tpu.memory_space<vmem>>, vector<128x64xbf16>
    %cst_16 = arith.constant dense<0.000000e+00> : vector<8x64xf32>
    %25 = tpu.matmul %23, %24, %cst_16 {dimension_numbers = #tpu.dot_dimension_numbers<[1], [0], [0], [1], [0, 0, 1, 1], [], []>} : vector<8x128xbf16>, vector<128x64xbf16>, vector<8x64xf32> -> vector<8x64xf32>
    %c0_17 = arith.constant 0 : index
    %c0_18 = arith.constant 0 : index
    %26 = vector.load %arg7[%c0_17, %c0_18] : memref<1x64xf32, #tpu.memory_space<vmem>>, vector<1x64xf32>
    %27 = vector.broadcast %26 : vector<1x64xf32> to vector<8x64xf32>
    %28 = arith.addf %25, %27 : vector<8x64xf32>
    %cst_19 = arith.constant 0.000000e+00 : f32
    %29 = vector.broadcast %cst_19 : f32 to vector<8x64xf32>
    %30 = arith.cmpf ogt, %28, %29 : vector<8x64xf32>
    %cst_20 = arith.constant 1.000000e-01 : f32
    %31 = vector.broadcast %cst_20 : f32 to vector<8x64xf32>
    %32 = arith.mulf %31, %28 : vector<8x64xf32>
    %33 = arith.select %30, %28, %32 : vector<8x64xi1>, vector<8x64xf32>
    %34 = arith.truncf %33 : vector<8x64xf32> to vector<8x64xbf16>
    %c0_21 = arith.constant 0 : index
    %c0_22 = arith.constant 0 : index
    %35 = vector.load %arg8[%c0_21, %c0_22] : memref<64x384xbf16, #tpu.memory_space<vmem>>, vector<64x384xbf16>
    %cst_23 = arith.constant dense<0.000000e+00> : vector<8x384xf32>
    %36 = tpu.matmul %34, %35, %cst_23 {dimension_numbers = #tpu.dot_dimension_numbers<[1], [0], [0], [1], [0, 0, 1, 1], [], []>} : vector<8x64xbf16>, vector<64x384xbf16>, vector<8x384xf32> -> vector<8x384xf32>
    %c0_24 = arith.constant 0 : index
    %c0_25 = arith.constant 0 : index
    %37 = vector.load %arg9[%c0_24, %c0_25] : memref<1x384xf32, #tpu.memory_space<vmem>>, vector<1x384xf32>
    %38 = vector.broadcast %37 : vector<1x384xf32> to vector<8x384xf32>
    %39 = arith.addf %36, %38 : vector<8x384xf32>
    %40 = arith.truncf %39 : vector<8x384xf32> to vector<8x384xbf16>
    %c0_26 = arith.constant 0 : index
    %c0_27 = arith.constant 0 : index
    %41 = vector.load %arg10[%c0_26, %c0_27] : memref<384x64xbf16, #tpu.memory_space<vmem>>, vector<384x64xbf16>
    %cst_28 = arith.constant dense<0.000000e+00> : vector<8x64xf32>
    %42 = tpu.matmul %40, %41, %cst_28 {dimension_numbers = #tpu.dot_dimension_numbers<[1], [0], [0], [1], [0, 0, 1, 1], [], []>} : vector<8x384xbf16>, vector<384x64xbf16>, vector<8x64xf32> -> vector<8x64xf32>
    %c0_29 = arith.constant 0 : index
    %c0_30 = arith.constant 0 : index
    %43 = vector.load %arg11[%c0_29, %c0_30] : memref<1x64xf32, #tpu.memory_space<vmem>>, vector<1x64xf32>
    %44 = vector.broadcast %43 : vector<1x64xf32> to vector<8x64xf32>
    %45 = arith.addf %42, %44 : vector<8x64xf32>
    %cst_31 = arith.constant 0.000000e+00 : f32
    %46 = vector.broadcast %cst_31 : f32 to vector<8x64xf32>
    %47 = arith.cmpf ogt, %45, %46 : vector<8x64xf32>
    %cst_32 = arith.constant 1.000000e-01 : f32
    %48 = vector.broadcast %cst_32 : f32 to vector<8x64xf32>
    %49 = arith.mulf %48, %45 : vector<8x64xf32>
    %50 = arith.select %47, %45, %49 : vector<8x64xi1>, vector<8x64xf32>
    %51 = arith.truncf %50 : vector<8x64xf32> to vector<8x64xbf16>
    %c0_33 = arith.constant 0 : index
    %c0_34 = arith.constant 0 : index
    %52 = vector.load %arg12[%c0_33, %c0_34] : memref<64x128xbf16, #tpu.memory_space<vmem>>, vector<64x128xbf16>
    %cst_35 = arith.constant dense<0.000000e+00> : vector<8x128xf32>
    %53 = tpu.matmul %51, %52, %cst_35 {dimension_numbers = #tpu.dot_dimension_numbers<[1], [0], [0], [1], [0, 0, 1, 1], [], []>} : vector<8x64xbf16>, vector<64x128xbf16>, vector<8x128xf32> -> vector<8x128xf32>
    %c0_36 = arith.constant 0 : index
    %c0_37 = arith.constant 0 : index
    %54 = vector.load %arg13[%c0_36, %c0_37] : memref<1x128xf32, #tpu.memory_space<vmem>>, vector<1x128xf32>
    %55 = vector.broadcast %54 : vector<1x128xf32> to vector<8x128xf32>
    %56 = arith.addf %53, %55 : vector<8x128xf32>
    %cst_38 = arith.constant 0.000000e+00 : f32
    %57 = vector.broadcast %cst_38 : f32 to vector<8x128xf32>
    %58 = arith.cmpf ogt, %56, %57 : vector<8x128xf32>
    %cst_39 = arith.constant 1.000000e-01 : f32
    %59 = vector.broadcast %cst_39 : f32 to vector<8x128xf32>
    %60 = arith.mulf %59, %56 : vector<8x128xf32>
    %61 = arith.select %58, %56, %60 : vector<8x128xi1>, vector<8x128xf32>
    %62 = arith.truncf %61 : vector<8x128xf32> to vector<8x128xbf16>
    %c0_40 = arith.constant 0 : index
    %c0_41 = arith.constant 0 : index
    %63 = vector.load %arg14[%c0_40, %c0_41] : memref<128x256xbf16, #tpu.memory_space<vmem>>, vector<128x256xbf16>
    %cst_42 = arith.constant dense<0.000000e+00> : vector<8x256xf32>
    %64 = tpu.matmul %62, %63, %cst_42 {dimension_numbers = #tpu.dot_dimension_numbers<[1], [0], [0], [1], [0, 0, 1, 1], [], []>} : vector<8x128xbf16>, vector<128x256xbf16>, vector<8x256xf32> -> vector<8x256xf32>
    %c0_43 = arith.constant 0 : index
    %c0_44 = arith.constant 0 : index
    %65 = vector.load %arg15[%c0_43, %c0_44] : memref<1x256xf32, #tpu.memory_space<vmem>>, vector<1x256xf32>
    %66 = vector.broadcast %65 : vector<1x256xf32> to vector<8x256xf32>
    %67 = arith.addf %64, %66 : vector<8x256xf32>
    %cst_45 = arith.constant 0.000000e+00 : f32
    %68 = vector.broadcast %cst_45 : f32 to vector<8x256xf32>
    %69 = arith.cmpf ogt, %67, %68 : vector<8x256xf32>
    %cst_46 = arith.constant 1.000000e-01 : f32
    %70 = vector.broadcast %cst_46 : f32 to vector<8x256xf32>
    %71 = arith.mulf %70, %67 : vector<8x256xf32>
    %72 = arith.select %69, %67, %71 : vector<8x256xi1>, vector<8x256xf32>
    %73 = arith.truncf %72 : vector<8x256xf32> to vector<8x256xbf16>
    %c0_47 = arith.constant 0 : index
    %c0_48 = arith.constant 0 : index
    %74 = vector.load %arg16[%c0_47, %c0_48] : memref<256x384xbf16, #tpu.memory_space<vmem>>, vector<256x384xbf16>
    %cst_49 = arith.constant dense<0.000000e+00> : vector<8x384xf32>
    %75 = tpu.matmul %73, %74, %cst_49 {dimension_numbers = #tpu.dot_dimension_numbers<[1], [0], [0], [1], [0, 0, 1, 1], [], []>} : vector<8x256xbf16>, vector<256x384xbf16>, vector<8x384xf32> -> vector<8x384xf32>
    %c0_50 = arith.constant 0 : index
    %c0_51 = arith.constant 0 : index
    %76 = vector.load %arg17[%c0_50, %c0_51] : memref<1x384xf32, #tpu.memory_space<vmem>>, vector<1x384xf32>
    %77 = vector.broadcast %76 : vector<1x384xf32> to vector<8x384xf32>
    %78 = arith.addf %75, %77 : vector<8x384xf32>
    %79 = arith.addf %78, %39 : vector<8x384xf32>
    %c0_52 = arith.constant 0 : index
    %c0_53 = arith.constant 0 : index
    %80 = vector.load %arg18[%c0_52, %c0_53] : memref<8x384xf32, #tpu.memory_space<vmem>>, vector<8x384xf32>
    tpu.vector_store %arg18[%c0_52, %c0_53], %79 {strides = array<i32>} : memref<8x384xf32, #tpu.memory_space<vmem>>, vector<8x384xf32>,
    return
  }
  func.func @transform_0(%arg0: i32) -> (i32, i32) {
    %c0_i32 = arith.constant 0 : i32
    %c0_i32_0 = arith.constant 0 : i32
    return %arg0, %c0_i32 : i32, i32
  }
  func.func @transform_1(%arg0: i32) -> (i32, i32) {
    %c0_i32 = arith.constant 0 : i32
    %c0_i32_0 = arith.constant 0 : i32
    %c0_i32_1 = arith.constant 0 : i32
    return %c0_i32, %c0_i32_0 : i32, i32
  }
  func.func @transform_2(%arg0: i32) -> (i32, i32) {
    %c0_i32 = arith.constant 0 : i32
    %c0_i32_0 = arith.constant 0 : i32
    %c0_i32_1 = arith.constant 0 : i32
    return %c0_i32, %c0_i32_0 : i32, i32
  }
  func.func @transform_3(%arg0: i32) -> (i32, i32) {
    %c0_i32 = arith.constant 0 : i32
    %c0_i32_0 = arith.constant 0 : i32
    %c0_i32_1 = arith.constant 0 : i32
    return %c0_i32, %c0_i32_0 : i32, i32
  }
  func.func @transform_4(%arg0: i32) -> (i32, i32) {
    %c0_i32 = arith.constant 0 : i32
    %c0_i32_0 = arith.constant 0 : i32
    %c0_i32_1 = arith.constant 0 : i32
    return %c0_i32, %c0_i32_0 : i32, i32
  }
  func.func @transform_5(%arg0: i32) -> (i32, i32) {
    %c0_i32 = arith.constant 0 : i32
    %c0_i32_0 = arith.constant 0 : i32
    %c0_i32_1 = arith.constant 0 : i32
    return %c0_i32, %c0_i32_0 : i32, i32
  }
  func.func @transform_6(%arg0: i32) -> (i32, i32) {
    %c0_i32 = arith.constant 0 : i32
    %c0_i32_0 = arith.constant 0 : i32
    %c0_i32_1 = arith.constant 0 : i32
    return %c0_i32, %c0_i32_0 : i32, i32
  }
  func.func @transform_7(%arg0: i32) -> (i32, i32) {
    %c0_i32 = arith.constant 0 : i32
    %c0_i32_0 = arith.constant 0 : i32
    %c0_i32_1 = arith.constant 0 : i32
    return %c0_i32, %c0_i32_0 : i32, i32
  }
  func.func @transform_8(%arg0: i32) -> (i32, i32) {
    %c0_i32 = arith.constant 0 : i32
    %c0_i32_0 = arith.constant 0 : i32
    %c0_i32_1 = arith.constant 0 : i32
    return %c0_i32, %c0_i32_0 : i32, i32
  }
  func.func @transform_9(%arg0: i32) -> (i32, i32) {
    %c0_i32 = arith.constant 0 : i32
    %c0_i32_0 = arith.constant 0 : i32
    %c0_i32_1 = arith.constant 0 : i32
    return %c0_i32, %c0_i32_0 : i32, i32
  }
  func.func @transform_10(%arg0: i32) -> (i32, i32) {
    %c0_i32 = arith.constant 0 : i32
    %c0_i32_0 = arith.constant 0 : i32
    %c0_i32_1 = arith.constant 0 : i32
    return %c0_i32, %c0_i32_0 : i32, i32
  }
  func.func @transform_11(%arg0: i32) -> (i32, i32) {
    %c0_i32 = arith.constant 0 : i32
    %c0_i32_0 = arith.constant 0 : i32
    %c0_i32_1 = arith.constant 0 : i32
    return %c0_i32, %c0_i32_0 : i32, i32
  }
  func.func @transform_12(%arg0: i32) -> (i32, i32) {
    %c0_i32 = arith.constant 0 : i32
    %c0_i32_0 = arith.constant 0 : i32
    %c0_i32_1 = arith.constant 0 : i32
    return %c0_i32, %c0_i32_0 : i32, i32
  }
  func.func @transform_13(%arg0: i32) -> (i32, i32) {
    %c0_i32 = arith.constant 0 : i32
    %c0_i32_0 = arith.constant 0 : i32
    %c0_i32_1 = arith.constant 0 : i32
    return %c0_i32, %c0_i32_0 : i32, i32
  }
  func.func @transform_14(%arg0: i32) -> (i32, i32) {
    %c0_i32 = arith.constant 0 : i32
    %c0_i32_0 = arith.constant 0 : i32
    %c0_i32_1 = arith.constant 0 : i32
    return %c0_i32, %c0_i32_0 : i32, i32
  }
  func.func @transform_15(%arg0: i32) -> (i32, i32) {
    %c0_i32 = arith.constant 0 : i32
    %c0_i32_0 = arith.constant 0 : i32
    %c0_i32_1 = arith.constant 0 : i32
    return %c0_i32, %c0_i32_0 : i32, i32
  }
  func.func @transform_16(%arg0: i32) -> (i32, i32) {
    %c0_i32 = arith.constant 0 : i32
    %c0_i32_0 = arith.constant 0 : i32
    %c0_i32_1 = arith.constant 0 : i32
    return %c0_i32, %c0_i32_0 : i32, i32
  }
  func.func @transform_17(%arg0: i32) -> (i32, i32) {
    %c0_i32 = arith.constant 0 : i32
    %c0_i32_0 = arith.constant 0 : i32
    return %arg0, %c0_i32 : i32, i32
  }
}

</mosaic_0001>

<bundles_post_ra>
// kernel: tpu_custom_call.1
= control target key start
LH: loop header
LB: loop body
LE: loop exit
PB: predicated region body
PF: predicated region fallthrough
CT: control target
= control target key end

     0   :  { %s3501_s0 = inlined_call_operand.vmem [shape: f32[8,360], index: 0, kind: input, shape index: {}]   ;;  %s3502_s1 = inlined_call_operand.hbm [shape: bf16[360,256], index: 1, kind: input, shape index: {}]   ;;  %s3503_s2 = inlined_call_operand.hbm [shape: f32[1,256], index: 2, kind: input, shape index: {}]   ;;  %s3504_s3 = inlined_call_operand.hbm [shape: bf16[256,128], index: 3, kind: input, shape index: {}]   ;;  %s3505_s4 = inlined_call_operand.hbm [shape: f32[1,128], index: 4, kind: input, shape index: {}]   ;;  %s3506_s5 = inlined_call_operand.vmem [shape: bf16[128,64], index: 5, kind: input, shape index: {}]   ;;  %s3507_s6 = inlined_call_operand.hbm [shape: f32[1,64], index: 6, kind: input, shape index: {}]   ;;  %s3508_s7 = inlined_call_operand.hbm [shape: bf16[64,384], index: 7, kind: input, shape index: {}]   ;;  %s3509_s8 = inlined_call_operand.hbm [shape: f32[1,384], index: 8, kind: input, shape index: {}]   ;;  %s3510_s9 = inlined_call_operand.vmem [shape: bf16[384,64], index: 9, kind: input, shape index: {}]   ;;  %s3511_s10 = inlined_call_operand.hbm [shape: f32[1,64], index: 10, kind: input, shape index: {}]   ;;  %s3512_s11 = inlined_call_operand.vmem [shape: bf16[64,128], index: 11, kind: input, shape index: {}]   ;;  %s3513_s12 = inlined_call_operand.hbm [shape: f32[1,128], index: 12, kind: input, shape index: {}]   ;;  %s3514_s13 = inlined_call_operand.hbm [shape: bf16[128,256], index: 13, kind: input, shape index: {}]   ;;  %s3515_s14 = inlined_call_operand.hbm [shape: f32[1,256], index: 14, kind: input, shape index: {}]   ;;  %s3516_s15 = inlined_call_operand.vmem [shape: bf16[256,384], index: 15, kind: input, shape index: {}]   ;;  %s3517_s16 = inlined_call_operand.vmem [shape: f32[1,384], index: 16, kind: input, shape index: {}]   ;;  %s3518_s17 = inlined_call_operand.hbm [shape: f32[8,384], index: 17, kind: output, shape index: {}]  }
   0x1   :  { %3521 = sst [smem:[#allocation28_spill]] %s3501_s0 }
   0x2   :  { %3522 = sst [smem:[#allocation29_spill]] %s3502_s1 }
   0x3   :  { %22 = vsyncpa [#allocation3], 0 }
   0x4   :  { %23 = vsyncpa [#allocation6], 0 }
   0x5   :  { %24 = vsyncpa [#allocation9], 0 }
   0x6   :  { %25 = vsyncpa [#allocation12], 0 }
   0x7   :  { %26 = vsyncpa [#allocation15], 0 }
   0x8   :  { %27 = vsyncpa [#allocation18], 0 }
   0x9   :  { %28 = vsyncpa [#allocation4], 0  ;;  %s2901_s24 = smov [#allocation5]   ;;  %s2902_s26 = smov [#allocation8]  }
   0xa   :  { %s49_s25 = sshll.u32 %s2901_s24, 4  ;;  %s71_s27 = sshll.u32 %s2902_s26, 4  ;;  %s50_s25 = int_to_ptr.vmem [resolvable:$true] %s49_s25  ;;  %s72_s27 = int_to_ptr.vmem [resolvable:$true] %s71_s27 }
   0xb   :  { %s2623_s0 = scalar_lea.hbm %s3503_s2, 32 }
   0xc   :  { %p2624_p0 = scmp.ne.s32.totalorder %s3503_s2, %s2623_s0  ;;  %p2627_p1 = scmp.lt.u32.totalorder %s2623_s0, %s3503_s2 }
   0xe   :  { %p2629_p2 = pnand %p2627_p1, %p2624_p0 }
  0x10   :  { %2632 = shalt.err (!%p2629_p2)
}
  0x11   :  { %s2633_s20 = scalar_lea.vmem %s50_s25, 32  ;;  %p2638_p4 = scmp.lt.s32.totalorder %s50_s25, %s50_s25 }
  0x12   :  { %p2634_p3 = scmp.ne.s32.totalorder %s50_s25, %s2633_s20  ;;  %p2639_p5 = scmp.lt.s32.totalorder %s2633_s20, %s2633_s20 }
  0x14   :  { %p2640_p6 = por %p2639_p5, %p2638_p4 }
  0x16   :  { %p2641_p7 = pnand %p2640_p6, %p2634_p3 }
  0x18   :  { %2644 = shalt.err (!%p2641_p7)
}
  0x19   :  { %52 = dma.hbm_to_vmem [thread:$0]  %s3503_s2, 32, %s50_s25, [#allocation6]  }
  0x1a   :  { %s2645_s26 = scalar_lea.hbm %s3505_s4, 16 }
  0x1b   :  { %p2646_p8 = scmp.ne.s32.totalorder %s3505_s4, %s2645_s26  ;;  %p2649_p9 = scmp.lt.u32.totalorder %s2645_s26, %s3505_s4 }
  0x1d   :  { %p2651_p10 = pnand %p2649_p9, %p2646_p8 }
  0x1f   :  { %2654 = shalt.err (!%p2651_p10)
}
  0x20   :  { %s2655_s18 = scalar_lea.vmem %s72_s27, 16  ;;  %s2659_s19 = scalar_lea.vmem %s72_s27, 32 }
  0x21   :  { %p2656_p11 = scmp.ne.s32.totalorder %s72_s27, %s2655_s18  ;;  %p2660_p12 = scmp.lt.s32.totalorder %s72_s27, %s72_s27 }
  0x22   :  { %p2661_p13 = scmp.lt.s32.totalorder %s2659_s19, %s2655_s18 }
  0x24   :  { %p2662_p0 = por %p2661_p13, %p2660_p12 }
  0x26   :  { %p2663_p1 = pnand %p2662_p0, %p2656_p11 }
  0x28   :  { %2666 = shalt.err (!%p2663_p1)
}
  0x29   :  { %74 = dma.hbm_to_vmem [thread:$0]  %s3505_s4, 16, %s72_s27, [#allocation9]  }
  0x2a   :  { %s2903_s1 = smov [#allocation11]   ;;  %s2667_s23 = scalar_lea.hbm %s3508_s7, 1536 }
  0x2b   :  { %s92_s20 = sshll.u32 %s2903_s1, 4  ;;  %p2668_p2 = scmp.ne.s32.totalorder %s3508_s7, %s2667_s23  ;;  %s93_s20 = int_to_ptr.vmem [resolvable:$true] %s92_s20 }
  0x2c   :  { %p2671_p3 = scmp.lt.u32.totalorder %s2667_s23, %s3508_s7 }
  0x2e   :  { %p2673_p4 = pnand %p2671_p3, %p2668_p2 }
  0x30   :  { %2676 = shalt.err (!%p2673_p4)
}
  0x31   :  { %s2677_s0 = scalar_lea.vmem %s93_s20, 1536  ;;  %p2682_p6 = scmp.lt.s32.totalorder %s93_s20, %s93_s20 }
  0x32   :  { %p2678_p5 = scmp.ne.s32.totalorder %s93_s20, %s2677_s0  ;;  %p2683_p7 = scmp.lt.s32.totalorder %s2677_s0, %s2677_s0 }
  0x34   :  { %p2684_p8 = por %p2683_p7, %p2682_p6 }
  0x36   :  { %p2685_p9 = pnand %p2684_p8, %p2678_p5 }
  0x38   :  { %2688 = shalt.err (!%p2685_p9)
}
  0x39   :  { %s2904_s4 = smov 192   ;;  %s2905_s27 = smov 12  }
  0x3a   :  { %98 = dma.hbm_to_vmem [thread:$0]  %s3508_s7, 1536, %s93_s20, [#allocation12], %s2904_s4, %s2904_s4, %s2905_s27  }
  0x3b   :  { %s2906_s19 = smov [#allocation14]   ;;  %s2689_s21 = scalar_lea.hbm %s3511_s10, 16 }
  0x3c   :  { %s117_s2 = sshll.u32 %s2906_s19, 4  ;;  %p2690_p10 = scmp.ne.s32.totalorder %s3511_s10, %s2689_s21  ;;  %s118_s2 = int_to_ptr.vmem [resolvable:$true] %s117_s2 }
  0x3d   :  { %p2693_p11 = scmp.lt.u32.totalorder %s2689_s21, %s3511_s10 }
  0x3f   :  { %p2695_p12 = pnand %p2693_p11, %p2690_p10 }
  0x41   :  { %2698 = shalt.err (!%p2695_p12)
}
  0x42   :  { %s2699_s28 = scalar_lea.vmem %s118_s2, 16  ;;  %s2703_s7 = scalar_lea.vmem %s118_s2, 32 }
  0x43   :  { %p2700_p13 = scmp.ne.s32.totalorder %s118_s2, %s2699_s28  ;;  %p2704_p0 = scmp.lt.s32.totalorder %s118_s2, %s118_s2 }
  0x44   :  { %p2705_p1 = scmp.lt.s32.totalorder %s2703_s7, %s2699_s28 }
  0x46   :  { %p2706_p2 = por %p2705_p1, %p2704_p0 }
  0x48   :  { %p2707_p3 = pnand %p2706_p2, %p2700_p13 }
  0x4a   :  { %2710 = shalt.err (!%p2707_p3)
}
  0x4b   :  { %120 = dma.hbm_to_vmem [thread:$0]  %s3511_s10, 16, %s118_s2, [#allocation15]  }
  0x4c   :  { %s2907_s0 = smov [#allocation17]   ;;  %s2908_s27 = smov [#allocation2]  }
  0x4d   :  { %s138_s4 = sshll.u32 %s2907_s0, 4  ;;  %s36_s30 = sshll.u32 %s2908_s27, 4  ;;  %s139_s4 = int_to_ptr.vmem [resolvable:$true] %s138_s4  ;;  %s3060_s30 = int_to_ptr.vmem [resolvable:$true] %s36_s30 }
  0x4e   :  { %s2711_s25 = scalar_lea.hbm %s3514_s13, 2048 }
  0x4f   :  { %p2712_p4 = scmp.ne.s32.totalorder %s3514_s13, %s2711_s25  ;;  %p2715_p5 = scmp.lt.u32.totalorder %s2711_s25, %s3514_s13 }
  0x51   :  { %p2717_p6 = pnand %p2715_p5, %p2712_p4 }
  0x53   :  { %2720 = shalt.err (!%p2717_p6)
}
  0x54   :  { %s2721_s10 = scalar_lea.vmem %s139_s4, 2048  ;;  %p2726_p8 = scmp.lt.s32.totalorder %s139_s4, %s139_s4 }
  0x55   :  { %p2722_p7 = scmp.ne.s32.totalorder %s139_s4, %s2721_s10  ;;  %p2727_p9 = scmp.lt.s32.totalorder %s2721_s10, %s2721_s10 }
  0x57   :  { %p2728_p10 = por %p2727_p9, %p2726_p8 }
  0x59   :  { %p2729_p11 = pnand %p2728_p10, %p2722_p7 }
  0x5b   :  { %2732 = shalt.err (!%p2729_p11)
}
  0x5c   :  { %s2909_s2 = smov 128   ;;  %s2910_s24 = smov 8  }
  0x5d   :  { %144 = dma.hbm_to_vmem [thread:$0]  %s3514_s13, 2048, %s139_s4, [#allocation18], %s2909_s2, %s2909_s2, %s2910_s24  }
  0x5e   :  { %s3523_s29 = sld [smem:[#allocation29_spill]] }
  0x64   :  { %s2733_s0 = scalar_lea.hbm %s3523_s29, 5760 }
  0x65   :  { %p2734_p12 = scmp.ne.s32.totalorder %s3523_s29, %s2733_s0  ;;  %p2737_p13 = scmp.lt.u32.totalorder %s2733_s0, %s3523_s29 }
  0x67   :  { %p2739_p0 = pnand %p2737_p13, %p2734_p12 }
  0x69   :  { %2742 = shalt.err (!%p2739_p0)
}
  0x6a   :  { %s2743_s1 = scalar_lea.vmem %s3060_s30, 5760  ;;  %p2748_p2 = scmp.lt.s32.totalorder %s3060_s30, %s3060_s30 }
  0x6b   :  { %p2744_p1 = scmp.ne.s32.totalorder %s3060_s30, %s2743_s1  ;;  %p2749_p3 = scmp.lt.s32.totalorder %s2743_s1, %s2743_s1 }
  0x6d   :  { %p2750_p4 = por %p2749_p3, %p2748_p2 }
  0x6f   :  { %p2751_p5 = pnand %p2750_p4, %p2744_p1 }
  0x71   :  { %2754 = shalt.err (!%p2751_p5)
}
  0x72   :  { %42 = dma.hbm_to_vmem [thread:$0]  %s3523_s29, 5760, %s3060_s30, [#allocation3], %s2909_s2, %s2909_s2, %s2910_s24  }
  0x73   :  { %s2911_s21 = smov [#allocation7]   ;;  %s2755_s26 = scalar_lea.hbm %s3504_s3, 2048 }
  0x74   :  { %s58_s22 = sshll.u32 %s2911_s21, 4  ;;  %p2756_p6 = scmp.ne.s32.totalorder %s3504_s3, %s2755_s26  ;;  %s59_s22 = int_to_ptr.vmem [resolvable:$true] %s58_s22 }
  0x75   :  { %p2759_p7 = scmp.lt.u32.totalorder %s2755_s26, %s3504_s3 }
  0x77   :  { %p2761_p8 = pnand %p2759_p7, %p2756_p6 }
  0x79   :  { %2764 = shalt.err (!%p2761_p8)
}
  0x7a   :  { %s2765_s27 = scalar_lea.vmem %s59_s22, 2048  ;;  %p2770_p10 = scmp.lt.s32.totalorder %s59_s22, %s59_s22 }
  0x7b   :  { %p2766_p9 = scmp.ne.s32.totalorder %s59_s22, %s2765_s27  ;;  %p2771_p11 = scmp.lt.s32.totalorder %s2765_s27, %s2765_s27 }
  0x7d   :  { %p2772_p12 = por %p2771_p11, %p2770_p10 }
  0x7f   :  { %p2773_p13 = pnand %p2772_p12, %p2766_p9 }
  0x81   :  { %2776 = shalt.err (!%p2773_p13)
}
  0x82   :  { %s2912_s30 = smov 64   ;;  %s2913_s2 = smov 4  }
  0x83   :  { %64 = dma.hbm_to_vmem [thread:$0]  %s3504_s3, 2048, %s59_s22, [#allocation6], %s2912_s30, %s2912_s30, %s2913_s2  }
  0x84   :  { %s2914_s18 = smov [#allocation10]   ;;  %s2915_s25 = smov [#allocation13]  }
  0x85   :  { %s83_s19 = sshll.u32 %s2914_s18, 4  ;;  %s105_s1 = sshll.u32 %s2915_s25, 4  ;;  %s84_s19 = int_to_ptr.vmem [resolvable:$true] %s83_s19  ;;  %s106_s1 = int_to_ptr.vmem [resolvable:$true] %s105_s1 }
  0x86   :  { %s2777_s21 = scalar_lea.hbm %s3507_s6, 16 }
  0x87   :  { %p2778_p0 = scmp.ne.s32.totalorder %s3507_s6, %s2777_s21  ;;  %p2781_p1 = scmp.lt.u32.totalorder %s2777_s21, %s3507_s6 }
  0x89   :  { %p2783_p2 = pnand %p2781_p1, %p2778_p0 }
  0x8b   :  { %2786 = shalt.err (!%p2783_p2)
}
  0x8c   :  { %s2787_s3 = scalar_lea.vmem %s84_s19, 16  ;;  %s2791_s22 = scalar_lea.vmem %s84_s19, 32 }
  0x8d   :  { %p2788_p3 = scmp.ne.s32.totalorder %s84_s19, %s2787_s3  ;;  %p2792_p4 = scmp.lt.s32.totalorder %s84_s19, %s84_s19 }
  0x8e   :  { %p2793_p5 = scmp.lt.s32.totalorder %s2791_s22, %s2787_s3 }
  0x90   :  { %p2794_p6 = por %p2793_p5, %p2792_p4 }
  0x92   :  { %p2795_p7 = pnand %p2794_p6, %p2788_p3 }
  0x94   :  { %2798 = shalt.err (!%p2795_p7)
}
  0x95   :  { %86 = dma.hbm_to_vmem [thread:$0]  %s3507_s6, 16, %s84_s19, [#allocation9]  }
  0x96   :  { %s2799_s30 = scalar_lea.hbm %s3509_s8, 48 }
  0x97   :  { %p2800_p8 = scmp.ne.s32.totalorder %s3509_s8, %s2799_s30  ;;  %p2803_p9 = scmp.lt.u32.totalorder %s2799_s30, %s3509_s8 }
  0x99   :  { %p2805_p10 = pnand %p2803_p9, %p2800_p8 }
  0x9b   :  { %2808 = shalt.err (!%p2805_p10)
}
  0x9c   :  { %s2809_s25 = scalar_lea.vmem %s106_s1, 48  ;;  %s2813_s13 = scalar_lea.vmem %s106_s1, 64 }
  0x9d   :  { %p2810_p11 = scmp.ne.s32.totalorder %s106_s1, %s2809_s25  ;;  %p2814_p12 = scmp.lt.s32.totalorder %s106_s1, %s106_s1 }
  0x9e   :  { %p2815_p13 = scmp.lt.s32.totalorder %s2813_s13, %s2809_s25 }
  0xa0   :  { %p2816_p0 = por %p2815_p13, %p2814_p12 }
  0xa2   :  { %p2817_p1 = pnand %p2816_p0, %p2810_p11 }
  0xa4   :  { %2820 = shalt.err (!%p2817_p1)
}
  0xa5   :  { %108 = dma.hbm_to_vmem [thread:$0]  %s3509_s8, 48, %s106_s1, [#allocation12]  }
  0xa6   :  { %s2916_s4 = smov [#allocation16]   ;;  %s2917_s23 = smov [#allocation19]  }
  0xa7   :  { %s129_s21 = sshll.u32 %s2916_s4, 4  ;;  %s151_s10 = sshll.u32 %s2917_s23, 4  ;;  %s130_s21 = int_to_ptr.vmem [resolvable:$true] %s129_s21  ;;  %s152_s10 = int_to_ptr.vmem [resolvable:$true] %s151_s10 }
  0xa8   :  { %s2821_s3 = scalar_lea.hbm %s3513_s12, 16 }
  0xa9   :  { %p2822_p2 = scmp.ne.s32.totalorder %s3513_s12, %s2821_s3  ;;  %p2825_p3 = scmp.lt.u32.totalorder %s2821_s3, %s3513_s12 }
  0xab   :  { %p2827_p4 = pnand %p2825_p3, %p2822_p2 }
  0xad   :  { %2830 = shalt.err (!%p2827_p4)
}
  0xae   :  { %s2831_s8 = scalar_lea.vmem %s130_s21, 16  ;;  %s2835_s1 = scalar_lea.vmem %s130_s21, 32 }
  0xaf   :  { %p2832_p5 = scmp.ne.s32.totalorder %s130_s21, %s2831_s8  ;;  %p2836_p6 = scmp.lt.s32.totalorder %s130_s21, %s130_s21 }
  0xb0   :  { %p2837_p7 = scmp.lt.s32.totalorder %s2835_s1, %s2831_s8 }
  0xb2   :  { %p2838_p8 = por %p2837_p7, %p2836_p6 }
  0xb4   :  { %p2839_p9 = pnand %p2838_p8, %p2832_p5 }
  0xb6   :  { %2842 = shalt.err (!%p2839_p9)
}
  0xb7   :  { %132 = dma.hbm_to_vmem [thread:$0]  %s3513_s12, 16, %s130_s21, [#allocation15]  }
  0xb8   :  { %s2843_s29 = scalar_lea.hbm %s3515_s14, 32 }
  0xb9   :  { %p2844_p10 = scmp.ne.s32.totalorder %s3515_s14, %s2843_s29  ;;  %p2847_p11 = scmp.lt.u32.totalorder %s2843_s29, %s3515_s14 }
  0xbb   :  { %p2849_p12 = pnand %p2847_p11, %p2844_p10 }
  0xbd   :  { %2852 = shalt.err (!%p2849_p12)
}
  0xbe   :  { %s2853_s19 = scalar_lea.vmem %s152_s10, 32  ;;  %p2858_p0 = scmp.lt.s32.totalorder %s152_s10, %s152_s10 }
  0xbf   :  { %p2854_p13 = scmp.ne.s32.totalorder %s152_s10, %s2853_s19  ;;  %p2859_p1 = scmp.lt.s32.totalorder %s2853_s19, %s2853_s19 }
  0xc1   :  { %p2860_p2 = por %p2859_p1, %p2858_p0 }
  0xc3   :  { %p2861_p3 = pnand %p2860_p2, %p2854_p13 }
  0xc5   :  { %2864 = shalt.err (!%p2861_p3)
}
  0xc6   :  { %154 = dma.hbm_to_vmem [thread:$0]  %s3515_s14, 32, %s152_s10, [#allocation18]  }
  0xc7   :  { %2887 = dma.done.wait [#allocation3], 5760  }
  0xc8   :  { %2888 = vsyncadd [#allocation3], 4294961536 }
  0xc9   :  { %2889 = dma.done.wait [#allocation6], 2080  }
  0xca   :  { %2890 = vsyncadd [#allocation6], 4294965216 }
  0xcb   :  { %2891 = dma.done.wait [#allocation9], 32  }
  0xcc   :  { %2892 = vsyncadd [#allocation9], 4294967264 }
  0xcd   :  { %2893 = dma.done.wait [#allocation12], 1584  }
  0xce   :  { %2894 = vsyncadd [#allocation12], 4294965712 }
  0xcf   :  { %2895 = dma.done.wait [#allocation15], 32  }
  0xd0   :  { %2896 = vsyncadd [#allocation15], 4294967264 }
  0xd1   :  { %2897 = dma.done.wait [#allocation18], 2080  }
  0xd2   :  { %2898 = vsyncadd [#allocation18], 4294965216  ;;  %v2399_v0 = vld [vmem:[#allocation2 + $0x4] ss:$8 sps:$4 sm:$0xff]   ;;  %v2401_v1 = vld [vmem:[#allocation2] ss:$8 sps:$4 sm:$0xff]  }
  0xd3   :  { %492 = vmatprep.subr.bf16.mxu0 %v2399_v0  ;;  %v2402_v2 = vld [vmem:[#allocation2 + $0x14] ss:$8 sps:$4 sm:$0xff]   ;;  %v2404_v3 = vld [vmem:[#allocation2 + $0x10] ss:$8 sps:$4 sm:$0xff]   ;;  %v2405_v4 = vld [vmem:[#allocation2 + $0x24] ss:$8 sps:$4 sm:$0xff]  }
  0xd4   :  { %493 = vmatpush1.bf16.msra.mxu0 %v2401_v1  ;;  %v2407_v5 = vld [vmem:[#allocation2 + $0x20] ss:$8 sps:$4 sm:$0xff]   ;;  %v2408_v6 = vld [vmem:[#allocation2 + $0x34] ss:$8 sps:$4 sm:$0xff]   ;;  %v2410_v7 = vld [vmem:[#allocation2 + $0x30] ss:$8 sps:$4 sm:$0xff]  }
  0xd5   :  { %494 = vmatprep.subr.bf16.mxu0 %v2402_v2  ;;  %v2411_v8 = vld [vmem:[#allocation2 + $0x44] ss:$8 sps:$4 sm:$0xff]   ;;  %v2413_v9 = vld [vmem:[#allocation2 + $0x40] ss:$8 sps:$4 sm:$0xff]   ;;  %v2414_v10 = vld [vmem:[#allocation2 + $0x54] ss:$8 sps:$4 sm:$0xff]  }
  0xd6   :  { %v2416_v11 = vld [vmem:[#allocation2 + $0x50] ss:$8 sps:$4 sm:$0xff]   ;;  %v2417_v12 = vld [vmem:[#allocation2 + $0x64] ss:$8 sps:$4 sm:$0xff]   ;;  %s3524_s23 = sld [smem:[#allocation28_spill]]  ;;  %v2918_v53 = vmov 0  }
  0xd7   :  { %v2419_v15 = vld [vmem:[#allocation2 + $0x60] ss:$8 sps:$4 sm:$0xff]   ;;  %v2420_v16 = vld [vmem:[#allocation2 + $0x74] ss:$8 sps:$4 sm:$0xff]   ;;  %v2422_v17 = vld [vmem:[#allocation2 + $0x70] ss:$8 sps:$4 sm:$0xff]  }
  0xd8   :  { %495 = vmatpush1.bf16.msra.mxu0 %v2404_v3  ;;  %v2423_v18 = vld [vmem:[#allocation2 + $0x84] ss:$8 sps:$4 sm:$0xff]   ;;  %v2425_v19 = vld [vmem:[#allocation2 + $0x80] ss:$8 sps:$4 sm:$0xff]   ;;  %v2426_v20 = vld [vmem:[#allocation2 + $0x94] ss:$8 sps:$4 sm:$0xff]  }
  0xd9   :  { %496 = vmatprep.subr.bf16.mxu0 %v2405_v4  ;;  %v2467_v21 = vld [vmem:[#allocation7 + $0x40] sm:$0xff]   ;;  %v2469_v24 = vld [vmem:[#allocation7 + $0x48] sm:$0xff]   ;;  %v2471_v26 = vld [vmem:[#allocation7 + $0x50] sm:$0xff]   ;;  %vm485_vm0 = vcmask 1043456   ;;  %vm481_vm1 = vcmask 850944   ;;  %vm2920_vm4 = vmmov 0  }
  0xda   :  { %v2468_v22 = vld [vmem:[#allocation7] sm:$0xff]   ;;  %2214 = vmatprep.subr.bf16.mxu1 %v2467_v21  ;;  %v2470_v25 = vld [vmem:[#allocation7 + $0x8] sm:$0xff]   ;;  %v2472_v29 = vld [vmem:[#allocation7 + $0x10] sm:$0xff]   ;;  %vm973_vm7 = vcmask 523264  }
  0xdb   :  { %v2428_v23 = vld [vmem:[#allocation2 + $0x90] ss:$8 sps:$4 sm:$0xff]   ;;  %2215 = vmatpush3.bf16.msra.mxu1 %v2468_v22  ;;  %v2429_v27 = vld [vmem:[#allocation2 + $0xa4] ss:$8 sps:$4 sm:$0xff]   ;;  %v2431_v28 = vld [vmem:[#allocation2 + $0xa0] ss:$8 sps:$4 sm:$0xff]  }
  0xdc   :  { %497 = vmatpush1.bf16.msra.mxu0 %v2407_v5  ;;  %v194_v13 = vld [vmem:[%s3524_s23 + $0x8] sm:$0xff]  ;;  %2216 = vmatprep.subr.bf16.mxu1 %v2469_v24  ;;  %v2432_v31 = vld [vmem:[#allocation2 + $0xb4] ss:$8 sps:$4 sm:$0xff]   ;;  %v2434_v32 = vld [vmem:[#allocation2 + $0xb0] ss:$8 sps:$4 sm:$0xff]  }
  0xdd   :  { %498 = vmatprep.subr.bf16.mxu0 %v2408_v6  ;;  %v197_v14 = vpack.c.bf16 %v194_v13, %v194_v13  ;;  %v2473_v30 = vld [vmem:[#allocation7 + $0x58] sm:$0xff]   ;;  %v2475_v35 = vld [vmem:[#allocation7 + $0x60] sm:$0xff]   ;;  %v2477_v38 = vld [vmem:[#allocation7 + $0x68] sm:$0xff]  }
  0xde   :  { %v2435_v33 = vld [vmem:[#allocation2 + $0xc4] ss:$8 sps:$4 sm:$0xff]   ;;  %v2437_v37 = vld [vmem:[#allocation2 + $0xc0] ss:$8 sps:$4 sm:$0xff]   ;;  %v2438_v39 = vld [vmem:[#allocation2 + $0xd4] ss:$8 sps:$4 sm:$0xff]  }
  0xdf   :  { %524 = vmatprep.mubr.bf16.mxu0 %v197_v14  ;;  %2217 = vmatpush3.bf16.msra.mxu1 %v2470_v25  ;;  %v2474_v34 = vld [vmem:[#allocation7 + $0x18] sm:$0xff]   ;;  %v2476_v36 = vld [vmem:[#allocation7 + $0x20] sm:$0xff]   ;;  %v2478_v40 = vld [vmem:[#allocation7 + $0x28] sm:$0xff]  }
  0xe0   :  { %499 = vmatpush1.bf16.msra.mxu0 %v2410_v7  ;;  %2218 = vmatprep.subr.bf16.mxu1 %v2471_v26  ;;  %v2440_v41 = vld [vmem:[#allocation2 + $0xd0] ss:$8 sps:$4 sm:$0xff]   ;;  %v2441_v42 = vld [vmem:[#allocation2 + $0xe4] ss:$8 sps:$4 sm:$0xff]   ;;  %v2443_v43 = vld [vmem:[#allocation2 + $0xe0] ss:$8 sps:$4 sm:$0xff]  }
  0xe1   :  { %500 = vmatprep.subr.bf16.mxu0 %v2411_v8  ;;  %v2444_v44 = vld [vmem:[#allocation2 + $0xf4] ss:$8 sps:$4 sm:$0xff]   ;;  %v2446_v45 = vld [vmem:[#allocation2 + $0xf0] ss:$8 sps:$4 sm:$0xff]   ;;  %v193_v46 = vld [vmem:[%s3524_s23] sm:$0xff]  ;;  %v2919_v7 = vmov 0.0   ;;  %v246_v8 = vlaneseq }
  0xe2   :  { %v2449_v47 = vld [vmem:[#allocation2 + $0x104] ss:$8 sps:$4 sm:$0xff]   ;;  %v2447_v48 = vld [vmem:[#allocation2 + $0x100] ss:$8 sps:$4 sm:$0xff]   ;;  %v196_v49 = vpack.c.bf16 %v193_v46, %v193_v46  ;;  %v2452_v50 = vld [vmem:[#allocation2 + $0x114] ss:$8 sps:$4 sm:$0xff]  }
  0xe3   :  { %2219 = vmatpush3.bf16.msra.mxu1 %v2472_v29  ;;  %v2450_v51 = vld [vmem:[#allocation2 + $0x110] ss:$8 sps:$4 sm:$0xff]   ;;  %v2455_v52 = vld [vmem:[#allocation2 + $0x124] ss:$8 sps:$4 sm:$0xff]   ;;  %v2453_v54 = vld [vmem:[#allocation2 + $0x120] ss:$8 sps:$4 sm:$0xff]  }
  0xe4   :  { %501 = vmatpush1.bf16.msra.mxu0 %v2413_v9  ;;  %2220 = vmatprep.subr.bf16.mxu1 %v2473_v30  ;;  %v2458_v55 = vld [vmem:[#allocation2 + $0x134] ss:$8 sps:$4 sm:$0xff]   ;;  %v2456_v56 = vld [vmem:[#allocation2 + $0x130] ss:$8 sps:$4 sm:$0xff]   ;;  %v2461_v57 = vld [vmem:[#allocation2 + $0x144] ss:$8 sps:$4 sm:$0xff]  }
  0xe5   :  { %502 = vmatprep.subr.bf16.mxu0 %v2414_v10  ;;  %v2459_v58 = vld [vmem:[#allocation2 + $0x140] ss:$8 sps:$4 sm:$0xff]   ;;  %v2464_v59 = vld [vmem:[#allocation2 + $0x154] ss:$8 sps:$4 sm:$0xff]   ;;  %v2462_v61 = vld [vmem:[#allocation2 + $0x150] ss:$8 sps:$4 sm:$0xff]  }
  0xe6   :  { %v243_v60 = vld [vmem:[#allocation2 + $0x160] sm:$0xff]  ;;  %v195_v0 = vld [vmem:[%s3524_s23 + $0x10] sm:$0xff]  ;;  %v3162_v9 = vshrl.u32 %v246_v8, 7  ;;  %v2486_v30 = vld [vmem:[%s3506_s5 + $0x18] sm:$0xff]  }
  0xe7   :  { %2221 = vmatpush3.bf16.msra.mxu1 %v2474_v34  ;;  %v2076_v62 = vcombine.high %v243_v60, %v243_v60  ;;  %v2075_v63 = vcombine.low %v243_v60, %v243_v60  ;;  %v198_v2 = vpack.c.bf16 %v195_v0, %v195_v0  ;;  %v2479_v3 = vld [vmem:[#allocation7 + $0x70] sm:$0xff]   ;;  %v2481_v5 = vld [vmem:[#allocation7 + $0x78] sm:$0xff]   ;;  %v2485_v29 = vld [vmem:[%s3506_s5 + $0x10] sm:$0xff]  }
  0xe8   :  { %503 = vmatpush1.bf16.msra.mxu0 %v2416_v11  ;;  %2222 = vmatprep.subr.bf16.mxu1 %v2475_v35  ;;  %v2480_v4 = vld [vmem:[#allocation7 + $0x30] sm:$0xff]   ;;  %v2482_v6 = vld [vmem:[#allocation7 + $0x38] sm:$0xff]   ;;  %v3165_v10 = vsub.s32 0, %v3162_v9 }
  0xe9   :  { %504 = vmatprep.subr.bf16.mxu0 %v2417_v12  ;;  %v487_v1 = vsel %vm485_vm0, %v2075_v63, 0  ;;  %v244_v11 = vld [vmem:[#allocation5] sm:$0x3]  ;;  %v3168_v12 = vsub.s32 1, %v3162_v9  ;;  %v2483_v26 = vld [vmem:[%s3506_s5] sm:$0xff]   ;;  %v2490_v34 = vld [vmem:[%s3506_s5 + $0x38] sm:$0xff]  }
  0xea   :  { %v249_v13 = vrot.slane %v244_v11, %v3165_v10  ;;  %v2493_v35 = vld [vmem:[#allocation11 + $0x4] ss:$12 sps:$4 sm:$0xff]   ;;  %v2519_v0 = vld [vmem:[%s3510_s9 + $0x68] sm:$0xff]  }
  0xeb   :  { %2223 = vmatpush3.bf16.msra.mxu1 %v2476_v36  ;;  %v253_v14 = vrot.slane %v244_v11, %v3168_v12  ;;  %v2513_v60 = vld [vmem:[%s3510_s9 + $0x58] sm:$0xff]   ;;  %v2517_v63 = vld [vmem:[%s3510_s9 + $0x20] sm:$0xff]  }
  0xec   :  { %505 = vmatpush1.bf16.msra.mxu0 %v2419_v15  ;;  %2224 = vmatprep.subr.bf16.mxu1 %v2477_v38 }
  0xed   :  { %506 = vmatprep.subr.bf16.mxu0 %v2420_v16 }
  0xef   :  { %2225 = vmatpush3.bf16.msra.mxu1 %v2478_v40 }
  0xf0   :  { %507 = vmatpush1.bf16.msra.mxu0 %v2422_v17  ;;  %2226 = vmatprep.subr.bf16.mxu1 %v2479_v3  ;;  %v2096_v3 = vld [vmem:[#allocation10] ss:$0 sm:$0xff] }
  0xf1   :  { %508 = vmatprep.subr.bf16.mxu0 %v2423_v18 }
  0xf3   :  { %2227 = vmatpush3.bf16.msra.mxu1 %v2480_v4 }
  0xf4   :  { %509 = vmatpush1.bf16.msra.mxu0 %v2425_v19  ;;  %2228 = vmatprep.subr.bf16.mxu1 %v2481_v5 }
  0xf5   :  { %510 = vmatprep.subr.bf16.mxu0 %v2426_v20 }
  0xf7   :  { %2229 = vmatpush3.bf16.msra.mxu1 %v2482_v6 }
  0xf8   :  { %511 = vmatpush1.bf16.msra.mxu0 %v2428_v23  ;;  %2308 = vmatprep.subr.bf16.mxu1 %v2919_v7 }
  0xf9   :  { %512 = vmatprep.subr.bf16.mxu0 %v2429_v27 }
  0xfc   :  { %513 = vmatpush1.bf16.msra.mxu0 %v2431_v28  ;;  %v2484_v28 = vld [vmem:[%s3506_s5 + $0x8] sm:$0xff]  }
  0xfd   :  { %514 = vmatprep.subr.bf16.mxu0 %v2432_v31  ;;  %v2487_v31 = vld [vmem:[%s3506_s5 + $0x20] sm:$0xff]  }
 0x100   :  { %515 = vmatpush1.bf16.msra.mxu0 %v2434_v32  ;;  %v2488_v32 = vld [vmem:[%s3506_s5 + $0x28] sm:$0xff]  }
 0x101   :  { %516 = vmatprep.subr.bf16.mxu0 %v2435_v33  ;;  %v2489_v33 = vld [vmem:[%s3506_s5 + $0x30] sm:$0xff]  }
 0x104   :  { %517 = vmatpush1.bf16.msra.mxu0 %v2437_v37  ;;  %v2079_v37 = vld [vmem:[#allocation8] ss:$0 sm:$0xff] }
 0x105   :  { %518 = vmatprep.subr.bf16.mxu0 %v2438_v39 }
 0x108   :  { %519 = vmatpush1.bf16.msra.mxu0 %v2440_v41 }
 0x109   :  { %520 = vmatprep.subr.bf16.mxu0 %v2441_v42 }
 0x10c   :  { %521 = vmatpush1.bf16.msra.mxu0 %v2443_v43 }
 0x10d   :  { %522 = vmatprep.subr.bf16.mxu0 %v2444_v44 }
 0x110   :  { %523 = vmatpush1.bf16.msra.mxu0 %v2446_v45  ;;  %v2491_v45 = vld [vmem:[#allocation11] ss:$12 sps:$4 sm:$0xff]  }
 0x111   :  { %533 = vmatprep.subr.bf16.mxu0 %v2449_v47  ;;  %v2496_v47 = vld [vmem:[#allocation11 + $0x1c] ss:$12 sps:$4 sm:$0xff]  }
 0x113   :  { %525 = vmatmul.mubr.bf16.vlgmr.msra.gmra.mrb[0].mxu0 %v196_v49  ;;  %v2499_v49 = vld [vmem:[#allocation11 + $0x34] ss:$12 sps:$4 sm:$0xff]  }
 0x114   :  { %534 = vmatpush1.bf16.msra.mxu0 %v2447_v48  ;;  %565 = vmatprep.mubr.bf16.mxu0 %v2918_v53  ;;  %v2494_v48 = vld [vmem:[#allocation11 + $0x18] ss:$12 sps:$4 sm:$0xff]  }
 0x115   :  { %535 = vmatprep.subr.bf16.mxu0 %v2452_v50  ;;  %v2497_v50 = vld [vmem:[#allocation11 + $0x30] ss:$12 sps:$4 sm:$0xff]  }
 0x118   :  { %536 = vmatpush1.bf16.msra.mxu0 %v2450_v51  ;;  %v2502_v51 = vld [vmem:[#allocation11 + $0x4c] ss:$12 sps:$4 sm:$0xff]  }
 0x119   :  { %537 = vmatprep.subr.bf16.mxu0 %v2455_v52  ;;  %v2500_v52 = vld [vmem:[#allocation11 + $0x48] ss:$12 sps:$4 sm:$0xff]  }
 0x11c   :  { %538 = vmatpush1.bf16.msra.mxu0 %v2453_v54  ;;  %v2507_v54 = vld [vmem:[%s3510_s9 + $0x40] sm:$0xff]  }
 0x11d   :  { %539 = vmatprep.subr.bf16.mxu0 %v2458_v55  ;;  %v2508_v55 = vld [vmem:[%s3510_s9] sm:$0xff]  }
 0x120   :  { %540 = vmatpush1.bf16.msra.mxu0 %v2456_v56  ;;  %v2509_v56 = vld [vmem:[%s3510_s9 + $0x48] sm:$0xff]  }
 0x121   :  { %541 = vmatprep.subr.bf16.mxu0 %v2461_v57  ;;  %v2510_v57 = vld [vmem:[%s3510_s9 + $0x8] sm:$0xff]  }
 0x124   :  { %542 = vmatpush1.bf16.msra.mxu0 %v2459_v58  ;;  %v2511_v58 = vld [vmem:[%s3510_s9 + $0x50] sm:$0xff]  }
 0x125   :  { %543 = vmatprep.subr.bf16.mxu0 %v2464_v59  ;;  %v2512_v59 = vld [vmem:[%s3510_s9 + $0x10] sm:$0xff]  }
 0x128   :  { %544 = vmatpush1.bf16.msra.mxu0 %v2462_v61  ;;  %v2514_v61 = vld [vmem:[%s3510_s9 + $0x18] sm:$0xff]  }
 0x129   :  { %2077 = vmatprep.subr.msk.bf16.mxu0 %vm485_vm0, %v2076_v62  ;;  %v2516_v62 = vld [vmem:[%s3510_s9 + $0x60] sm:$0xff]  }
 0x12c   :  { %546 = vmatpush1.bf16.msra.mxu0 %v487_v1  ;;  %v2520_v1 = vld [vmem:[%s3510_s9 + $0x28] sm:$0xff]  }
 0x12d   :  { %2250 = vmatprep.subr.bf16.mxu0 %v2507_v54  ;;  %v2535_v54 = vld [vmem:[#allocation17] ss:$8 sps:$4 sm:$0xff]  }
 0x12f   :  { %2078 = vmatmul.mubr.msk.bf16.vlgmr.msra.gmra.mrb[0].mxu0 %vm481_vm1, %v198_v2  ;;  %v2522_v2 = vld [vmem:[%s3510_s9 + $0x70] sm:$0xff]  }
 0x130   :  { %2251 = vmatpush3.bf16.msra.mxu0 %v2508_v55  ;;  %v2537_v55 = vld [vmem:[#allocation17 + $0x4] ss:$8 sps:$4 sm:$0xff]  }
 0x131   :  { %2252 = vmatprep.subr.bf16.mxu0 %v2509_v56  ;;  %v2540_v56 = vld [vmem:[#allocation17 + $0x14] ss:$8 sps:$4 sm:$0xff]  }
 0x134   :  { %2253 = vmatpush3.bf16.msra.mxu0 %v2510_v57  ;;  %v2538_v57 = vld [vmem:[#allocation17 + $0x10] ss:$8 sps:$4 sm:$0xff]  }
 0x135   :  { %2254 = vmatprep.subr.bf16.mxu0 %v2511_v58  ;;  %v2543_v58 = vld [vmem:[#allocation17 + $0x24] ss:$8 sps:$4 sm:$0xff]  }
 0x138   :  { %2255 = vmatpush3.bf16.msra.mxu0 %v2512_v59  ;;  %v2541_v59 = vld [vmem:[#allocation17 + $0x20] ss:$8 sps:$4 sm:$0xff]  }
 0x139   :  { %2256 = vmatprep.subr.bf16.mxu0 %v2513_v60  ;;  %v2546_v60 = vld [vmem:[#allocation17 + $0x34] ss:$8 sps:$4 sm:$0xff]  }
 0x13c   :  { %2257 = vmatpush3.bf16.msra.mxu0 %v2514_v61  ;;  %v2544_v61 = vld [vmem:[#allocation17 + $0x30] ss:$8 sps:$4 sm:$0xff]  }
 0x13d   :  { %2258 = vmatprep.subr.bf16.mxu0 %v2516_v62  ;;  %v2547_v62 = vld [vmem:[#allocation17 + $0x40] ss:$8 sps:$4 sm:$0xff]  }
 0x140   :  { %2259 = vmatpush3.bf16.msra.mxu0 %v2517_v63  ;;  %v2552_v63 = vld [vmem:[#allocation17 + $0x54] ss:$8 sps:$4 sm:$0xff]  }
 0x141   :  { %2260 = vmatprep.subr.bf16.mxu0 %v2519_v0  ;;  %v2550_v0 = vld [vmem:[#allocation17 + $0x50] ss:$8 sps:$4 sm:$0xff]  }
 0x144   :  { %2261 = vmatpush3.bf16.msra.mxu0 %v2520_v1 }
 0x145   :  { %2262 = vmatprep.subr.bf16.mxu0 %v2522_v2 }
 0x202   :  { %v567_v15 = vpop.f32.mrb[0].mxu0 }
 0x203   :  { %v2372_v16 = vadd.f32 %v567_v15, %v249_v13  ;;  %v569_v17 = vpop.f32.mrb[1].mxu0  ;;  %v2503_v15 = vld [vmem:[#allocation11 + $0x8] ss:$12 sps:$4 sm:$0xff]  }
 0x204   :  { %v2373_v18 = vadd.f32 %v569_v17, %v253_v14  ;;  %v571_v19 = vpop.f32.mrb[2].mxu0  ;;  %v2504_v17 = vld [vmem:[#allocation11 + $0x20] ss:$12 sps:$4 sm:$0xff]  }
 0x205   :  { %vm574_vm2 = vcmp.gt.f32.partialorder %v2372_v16, 0.0  ;;  %v576_v20 = vmul.f32 0.1, %v2372_v16  ;;  %v572_v21 = vpop.f32.mrb[3].mxu0  ;;  %v2506_v19 = vld [vmem:[#allocation11 + $0x50] ss:$12 sps:$4 sm:$0xff]  }
 0x206   :  { %vm575_vm3 = vcmp.gt.f32.partialorder %v2373_v18, 0.0  ;;  %v577_v22 = vmul.f32 0.1, %v2373_v18  ;;  %v2518_v21 = vld [vmem:[%s3510_s9 + $0x88] sm:$0xff]  }
 0x207   :  { %v578_v23 = vsel %vm574_vm2, %v2372_v16, %v576_v20  ;;  %v2515_v20 = vld [vmem:[%s3510_s9 + $0x80] sm:$0xff]  }
 0x208   :  { %v579_v24 = vsel %vm575_vm3, %v2373_v18, %v577_v22  ;;  %v580_v27 = vpack.c.bf16 %v578_v23, %v578_v23  ;;  %v2505_v18 = vld [vmem:[#allocation11 + $0x38] ss:$12 sps:$4 sm:$0xff]  }
 0x209   :  { %v581_v25 = vpack.c.bf16 %v579_v24, %v579_v24  ;;  %v2521_v22 = vld [vmem:[%s3510_s9 + $0x90] sm:$0xff]   ;;  %v2524_v24 = vld [vmem:[%s3510_s9 + $0x98] sm:$0xff]  }
 0x20a   :  { %v2523_v23 = vld [vmem:[%s3510_s9 + $0x30] sm:$0xff]  }
 0x20b   :  { %749 = vmatprep.mubr.bf16.mxu1 %v581_v25  ;;  %2263 = vmatpush3.bf16.msra.mxu0 %v2523_v23  ;;  %v2525_v25 = vld [vmem:[%s3510_s9 + $0x78] sm:$0xff]   ;;  %v2556_v23 = vld [vmem:[#allocation17 + $0x70] ss:$8 sps:$4 sm:$0xff]  }
 0x20c   :  { %750 = vmatmul.mubr.bf16.vlgmr.msra.gmra.mrb[0].mxu1 %v580_v27  ;;  %2264 = vmatprep.subr.bf16.mxu0 %v2525_v25  ;;  %v2527_v27 = vld [vmem:[%s3510_s9 + $0xa0] sm:$0xff]  }
 0x20d   :  { %2309 = vmatpush3.bf16.msra.mxu1 %v2483_v26  ;;  %2324 = vmatprep.mubr.msk.bf16.mxu1 %vm2920_vm4, %v2919_v7  ;;  %v2526_v26 = vld [vmem:[%s3510_s9 + $0x38] sm:$0xff]   ;;  %v2561_v25 = vld [vmem:[%s3516_s15 + $0x4] ss:$12 sps:$4 sm:$0xff]  }
 0x20e   :  { %2310 = vmatprep.subr.bf16.mxu1 %v2919_v7 }
 0x20f   :  { %2265 = vmatpush3.bf16.msra.mxu0 %v2526_v26  ;;  %v2564_v26 = vld [vmem:[%s3516_s15 + $0x1c] ss:$12 sps:$4 sm:$0xff]  }
 0x210   :  { %2360 = vmatprep.subr.bf16.mxu0 %v2919_v7 }
 0x211   :  { %2311 = vmatpush3.bf16.msra.mxu1 %v2484_v28  ;;  %v2528_v28 = vld [vmem:[%s3510_s9 + $0xa8] sm:$0xff]  }
 0x212   :  { %2312 = vmatprep.subr.bf16.mxu1 %v2919_v7 }
 0x215   :  { %2313 = vmatpush3.bf16.msra.mxu1 %v2485_v29  ;;  %v2529_v29 = vld [vmem:[%s3510_s9 + $0xb0] sm:$0xff]  }
 0x216   :  { %2314 = vmatprep.subr.bf16.mxu1 %v2919_v7 }
 0x219   :  { %2315 = vmatpush3.bf16.msra.mxu1 %v2486_v30  ;;  %v2530_v30 = vld [vmem:[%s3510_s9 + $0xb8] sm:$0xff]  }
 0x21a   :  { %2316 = vmatprep.subr.bf16.mxu1 %v2919_v7 }
 0x21d   :  { %2317 = vmatpush3.bf16.msra.mxu1 %v2487_v31  ;;  %v892_v31 = vld [vmem:[#allocation13] sm:$0x7] }
 0x21e   :  { %2318 = vmatprep.subr.bf16.mxu1 %v2919_v7 }
 0x221   :  { %2319 = vmatpush3.bf16.msra.mxu1 %v2488_v32  ;;  %v897_v32 = vrot.slane %v892_v31, %v3165_v10 }
 0x222   :  { %2320 = vmatprep.subr.bf16.mxu1 %v2919_v7 }
 0x225   :  { %2321 = vmatpush3.bf16.msra.mxu1 %v2489_v33  ;;  %v901_v33 = vrot.slane %v892_v31, %v3168_v12 }
 0x226   :  { %2322 = vmatprep.subr.bf16.mxu1 %v2919_v7 }
 0x229   :  { %2323 = vmatpush3.bf16.msra.mxu1 %v2490_v34 }
 0x22a   :  { %977 = vmatprep.subr.bf16.mxu1 %v2493_v35 }
 0x2df   :  { %v2230_v36 = vpop.f32.mrb[0].mxu1 }
 0x2e0   :  { %v2231_v38 = vpop.f32.mrb[1].mxu1 }
 0x2e1   :  { %v2232_v39 = vadd.f32 %v2231_v38, %v2230_v36  ;;  %v2233_v40 = vpop.f32.mrb[2].mxu1 }
 0x2e2   :  { %v2234_v41 = vpop.f32.mrb[3].mxu1 }
 0x2e3   :  { %v752_v42 = vadd.f32 %v2232_v39, %v2079_v37 }
 0x2e5   :  { %vm757_vm5 = vcmp.gt.f32.partialorder %v752_v42, 0.0  ;;  %v758_v43 = vmul.f32 0.1, %v752_v42 }
 0x2e7   :  { %v759_v44 = vsel %vm757_vm5, %v752_v42, %v758_v43  ;;  %v904_v42 = vsub.s32 2, %v3162_v9 }
 0x2e8   :  { %v760_v46 = vpack.c.bf16 %v759_v44, %v759_v44 }
 0x2e9   :  { %v905_v43 = vrot.slane %v892_v31, %v904_v42  ;;  %v2570_v31 = vld [vmem:[%s3516_s15 + $0x4c] ss:$12 sps:$4 sm:$0xff]  }
 0x2ea   :  { %2325 = vmatmul.mubr.bf16.vlgmr.msra.gmra.mrb[4].mxu1 %v760_v46 }
 0x2eb   :  { %978 = vmatpush1.bf16.msra.mxu1 %v2491_v45  ;;  %1009 = vmatprep.mubr.bf16.mxu1 %v2918_v53 }
 0x2ec   :  { %979 = vmatprep.subr.bf16.mxu1 %v2496_v47 }
 0x2ef   :  { %980 = vmatpush1.bf16.msra.mxu1 %v2494_v48 }
 0x2f0   :  { %981 = vmatprep.subr.bf16.mxu1 %v2499_v49 }
 0x2f3   :  { %982 = vmatpush1.bf16.msra.mxu1 %v2497_v50  ;;  %v2531_v50 = vld [vmem:[%s3512_s11] sm:$0xff]  }
 0x2f4   :  { %983 = vmatprep.subr.bf16.mxu1 %v2502_v51  ;;  %v2532_v51 = vld [vmem:[%s3512_s11 + $0x8] sm:$0xff]  }
 0x2f7   :  { %984 = vmatpush1.bf16.msra.mxu1 %v2500_v52  ;;  %v2533_v52 = vld [vmem:[%s3512_s11 + $0x10] sm:$0xff]  }
 0x2f8   :  { %2328 = vmatprep.subr.bf16.mxu1 %v2919_v7 }
 0x3bd   :  { %v866_v4 = vpop.f32.mrb[4].mxu1 }
 0x3be   :  { %v867_v5 = vadd.f32 %v2096_v3, %v866_v4  ;;  %v2326_v6 = vpop.f32.mrb[5].mxu1 }
 0x3bf   :  { %v869_v8 = vpop.f32.mrb[6].mxu1  ;;  %v2119_v6 = vld [vmem:[#allocation14] ss:$0 sm:$0xff] }
 0x3c0   :  { %vm872_vm6 = vcmp.gt.f32.partialorder %v867_v5, 0.0  ;;  %v873_v11 = vmul.f32 0.1, %v867_v5  ;;  %v2327_v13 = vpop.f32.mrb[7].mxu1 }
 0x3c2   :  { %v874_v14 = vsel %vm872_vm6, %v867_v5, %v873_v11 }
 0x3c3   :  { %v875_v16 = vpack.c.bf16 %v874_v14, %v874_v14 }
 0x3c5   :  { %2117 = vmatmul.mubr.msk.bf16.vlgmr.msra.gmra.mrb[8].mxu1 %vm973_vm7, %v875_v16 }
 0x3c6   :  { %2329 = vmatpush3.bf16.msra.mxu1 %v2503_v15  ;;  %2336 = vmatprep.mubr.msk.bf16.mxu1 %vm2920_vm4, %v2919_v7 }
 0x3c7   :  { %2330 = vmatprep.subr.bf16.mxu1 %v2919_v7 }
 0x3ca   :  { %2331 = vmatpush3.bf16.msra.mxu1 %v2504_v17 }
 0x3cb   :  { %2332 = vmatprep.subr.bf16.mxu1 %v2919_v7 }
 0x3ce   :  { %2333 = vmatpush3.bf16.msra.mxu1 %v2505_v18 }
 0x3cf   :  { %2334 = vmatprep.subr.bf16.mxu1 %v2919_v7 }
 0x3d2   :  { %2335 = vmatpush3.bf16.msra.mxu1 %v2506_v19 }
 0x3d3   :  { %2340 = vmatprep.subr.bf16.mxu1 %v2919_v7 }
 0x3d5   :  { %2337 = vmatmul.mubr.msk.bf16.vlgmr.msra.gmra.mrb[12].mxu1 %vm973_vm7, %v875_v16 }
 0x3d6   :  { %2341 = vmatpush3.bf16.msra.mxu1 %v2515_v20  ;;  %2356 = vmatprep.mubr.msk.bf16.mxu1 %vm2920_vm4, %v2919_v7  ;;  %v2555_v20 = vld [vmem:[#allocation17 + $0x64] ss:$8 sps:$4 sm:$0xff]  }
 0x3d7   :  { %2342 = vmatprep.subr.bf16.mxu1 %v2919_v7 }
 0x3da   :  { %2343 = vmatpush3.bf16.msra.mxu1 %v2518_v21  ;;  %v2553_v21 = vld [vmem:[#allocation17 + $0x60] ss:$8 sps:$4 sm:$0xff]  }
 0x3db   :  { %2344 = vmatprep.subr.bf16.mxu1 %v2919_v7 }
 0x3de   :  { %2345 = vmatpush3.bf16.msra.mxu1 %v2521_v22  ;;  %v2558_v22 = vld [vmem:[#allocation17 + $0x74] ss:$8 sps:$4 sm:$0xff]  }
 0x3df   :  { %2346 = vmatprep.subr.bf16.mxu1 %v2919_v7 }
 0x3e2   :  { %2347 = vmatpush3.bf16.msra.mxu1 %v2524_v24  ;;  %v2559_v24 = vld [vmem:[%s3516_s15] ss:$12 sps:$4 sm:$0xff]  }
 0x3e3   :  { %2348 = vmatprep.subr.bf16.mxu1 %v2919_v7 }
 0x3e6   :  { %2349 = vmatpush3.bf16.msra.mxu1 %v2527_v27  ;;  %v2562_v27 = vld [vmem:[%s3516_s15 + $0x18] ss:$12 sps:$4 sm:$0xff]  }
 0x3e7   :  { %2350 = vmatprep.subr.bf16.mxu1 %v2919_v7 }
 0x3ea   :  { %2351 = vmatpush3.bf16.msra.mxu1 %v2528_v28  ;;  %v2567_v28 = vld [vmem:[%s3516_s15 + $0x34] ss:$12 sps:$4 sm:$0xff]  }
 0x3eb   :  { %2352 = vmatprep.subr.bf16.mxu1 %v2919_v7 }
 0x3ee   :  { %2353 = vmatpush3.bf16.msra.mxu1 %v2529_v29  ;;  %v2586_v29 = vld [vmem:[%s3516_s15 + $0xc8] ss:$12 sps:$4 sm:$0xff]  }
 0x3ef   :  { %2354 = vmatprep.subr.bf16.mxu1 %v2919_v7 }
 0x3f2   :  { %2355 = vmatpush3.bf16.msra.mxu1 %v2530_v30  ;;  %v2565_v30 = vld [vmem:[%s3516_s15 + $0x30] ss:$12 sps:$4 sm:$0xff]  }
 0x3f3   :  { %1538 = vmatprep.subr.bf16.mxu1 %v2537_v55  ;;  %v2610_v55 = vld [vmem:[%s3516_s15 + $0x13c] ss:$12 sps:$4 sm:$0xff]  }
 0x498   :  { %v1011_v34 = vpop.f32.mrb[8].mxu1 }
 0x499   :  { %v3299_v35 = vadd.f32 %v1011_v34, %v897_v32  ;;  %v1013_v36 = vpop.f32.mrb[9].mxu1  ;;  %v2568_v32 = vld [vmem:[%s3516_s15 + $0x48] ss:$12 sps:$4 sm:$0xff]   ;;  %v2571_v34 = vld [vmem:[%s3516_s15 + $0x60] ss:$12 sps:$4 sm:$0xff]  }
 0x49a   :  { %v3301_v37 = vadd.f32 %v1013_v36, %v901_v33  ;;  %v1015_v38 = vpop.f32.mrb[10].mxu1  ;;  %v2573_v33 = vld [vmem:[%s3516_s15 + $0x64] ss:$12 sps:$4 sm:$0xff]   ;;  %v2576_v36 = vld [vmem:[%s3516_s15 + $0x7c] ss:$12 sps:$4 sm:$0xff]  }
 0x49b   :  { %v1016_v39 = vpop.f32.mrb[11].mxu1  ;;  %v1058_v41 = vpack.c.bf16 %v3299_v35, %v3299_v35  ;;  %v2574_v38 = vld [vmem:[%s3516_s15 + $0x78] ss:$12 sps:$4 sm:$0xff]  }
 0x49c   :  { %v1059_v40 = vpack.c.bf16 %v3301_v37, %v3301_v37  ;;  %v2579_v39 = vld [vmem:[%s3516_s15 + $0x94] ss:$12 sps:$4 sm:$0xff]  }
 0x49e   :  { %1292 = vmatprep.mubr.bf16.mxu0 %v1059_v40  ;;  %v2577_v40 = vld [vmem:[%s3516_s15 + $0x90] ss:$12 sps:$4 sm:$0xff]  }
 0x49f   :  { %1293 = vmatmul.mubr.bf16.vlgmr.msra.gmra.mrb[4].mxu0 %v1058_v41  ;;  %v2582_v41 = vld [vmem:[%s3516_s15 + $0xac] ss:$12 sps:$4 sm:$0xff]  }
 0x4a0   :  { %2368 = vmatprep.mubr.msk.bf16.mxu0 %vm2920_vm4, %v2919_v7  ;;  %2361 = vmatpush3.bf16.msra.mxu0 %v2531_v50  ;;  %v2593_v50 = vld [vmem:[%s3516_s15 + $0xf0] ss:$12 sps:$4 sm:$0xff]  }
 0x4a1   :  { %2362 = vmatprep.subr.bf16.mxu0 %v2919_v7 }
 0x4a4   :  { %2363 = vmatpush3.bf16.msra.mxu0 %v2532_v51  ;;  %v2600_v51 = vld [vmem:[%s3516_s15 + $0x10c] ss:$12 sps:$4 sm:$0xff]  }
 0x4a5   :  { %2364 = vmatprep.subr.bf16.mxu0 %v2919_v7 }
 0x4a8   :  { %v1052_v44 = vpop.f32.mrb[12].mxu1  ;;  %2365 = vmatpush3.bf16.msra.mxu0 %v2533_v52  ;;  %v2598_v52 = vld [vmem:[%s3516_s15 + $0x108] ss:$12 sps:$4 sm:$0xff]  }
 0x4a9   :  { %v3312_v45 = vadd.f32 %v1052_v44, %v905_v43  ;;  %v2338_v46 = vpop.f32.mrb[13].mxu1  ;;  %2366 = vmatprep.subr.bf16.mxu0 %v2919_v7  ;;  %v2549_v7 = vld [vmem:[#allocation17 + $0x44] ss:$8 sps:$4 sm:$0xff]   ;;  %v2580_v43 = vld [vmem:[%s3516_s15 + $0xa8] ss:$12 sps:$4 sm:$0xff]  }
 0x4aa   :  { %v1055_v47 = vpop.f32.mrb[14].mxu1  ;;  %v2585_v44 = vld [vmem:[%s3516_s15 + $0xc4] ss:$12 sps:$4 sm:$0xff]   ;;  %v2583_v46 = vld [vmem:[%s3516_s15 + $0xc0] ss:$12 sps:$4 sm:$0xff]  }
 0x4ab   :  { %v1060_v48 = vpack.c.bf16 %v3312_v45, %v3312_v45  ;;  %v2339_v49 = vpop.f32.mrb[15].mxu1  ;;  %v2590_v47 = vld [vmem:[%s3516_s15 + $0xdc] ss:$12 sps:$4 sm:$0xff]  }
 0x4ac   :  { %v2595_v49 = vld [vmem:[%s3516_s15 + $0xf4] ss:$12 sps:$4 sm:$0xff]  }
 0x4ad   :  { %2357 = vmatmul.mubr.bf16.vlgmr.msra.gmra.mrb[16].mxu1 %v1060_v48  ;;  %v2588_v48 = vld [vmem:[%s3516_s15 + $0xd8] ss:$12 sps:$4 sm:$0xff]  }
 0x4ae   :  { %1570 = vmatprep.mubr.bf16.mxu1 %v2918_v53  ;;  %v2534_v53 = vld [vmem:[%s3512_s11 + $0x18] sm:$0xff]   ;;  %1539 = vmatpush1.bf16.msra.mxu1 %v2535_v54  ;;  %v2603_v54 = vld [vmem:[%s3516_s15 + $0x120] ss:$12 sps:$4 sm:$0xff]  }
 0x4af   :  { %2367 = vmatpush3.bf16.msra.mxu0 %v2534_v53  ;;  %1540 = vmatprep.subr.bf16.mxu1 %v2540_v56  ;;  %v2605_v53 = vld [vmem:[%s3516_s15 + $0x124] ss:$12 sps:$4 sm:$0xff]  }
 0x4b0   :  { %1924 = vmatprep.subr.bf16.mxu0 %v2561_v25  ;;  %v2608_v56 = vld [vmem:[%s3516_s15 + $0x138] ss:$12 sps:$4 sm:$0xff]  }
 0x4b2   :  { %1541 = vmatpush1.bf16.msra.mxu1 %v2538_v57  ;;  %v2144_v57 = vld [vmem:[#allocation16] ss:$0 sm:$0xff] }
 0x4b3   :  { %1542 = vmatprep.subr.bf16.mxu1 %v2543_v58 }
 0x4b6   :  { %1543 = vmatpush1.bf16.msra.mxu1 %v2541_v59 }
 0x4b7   :  { %1544 = vmatprep.subr.bf16.mxu1 %v2546_v60 }
 0x4ba   :  { %1545 = vmatpush1.bf16.msra.mxu1 %v2544_v61 }
 0x4bb   :  { %1546 = vmatprep.subr.bf16.mxu1 %v2549_v7 }
 0x4be   :  { %1547 = vmatpush1.bf16.msra.mxu1 %v2547_v62 }
 0x4bf   :  { %1548 = vmatprep.subr.bf16.mxu1 %v2552_v63 }
 0x4c2   :  { %1549 = vmatpush1.bf16.msra.mxu1 %v2550_v0  ;;  %v2587_v0 = vld [vmem:[%s3516_s15 + $0x8] ss:$12 sps:$4 sm:$0xff]  }
 0x4c3   :  { %1550 = vmatprep.subr.bf16.mxu1 %v2555_v20  ;;  %v2620_v20 = vld [vmem:[%s3516_s15 + $0x16c] ss:$12 sps:$4 sm:$0xff]  }
 0x4c6   :  { %1551 = vmatpush1.bf16.msra.mxu1 %v2553_v21  ;;  %v2621_v21 = vld [vmem:[%s3516_s15 + $0x170] ss:$12 sps:$4 sm:$0xff]  }
 0x4c7   :  { %1552 = vmatprep.subr.bf16.mxu1 %v2558_v22  ;;  %v2618_v22 = vld [vmem:[%s3516_s15 + $0x168] ss:$12 sps:$4 sm:$0xff]  }
 0x4ca   :  { %1553 = vmatpush1.bf16.msra.mxu1 %v2556_v23  ;;  %v2622_v23 = vld [vmem:[%s3516_s15 + $0xb0] ss:$12 sps:$4 sm:$0xff]  }
 0x4cb   :  { %2286 = vmatprep.subr.bf16.mxu1 %v2586_v29 }
 0x572   :  { %v2266_v1 = vpop.f32.mrb[4].mxu0 }
 0x573   :  { %v2267_v2 = vpop.f32.mrb[5].mxu0 }
 0x574   :  { %v2268_v3 = vadd.f32 %v2267_v2, %v2266_v1  ;;  %v2269_v4 = vpop.f32.mrb[6].mxu0  ;;  %v2591_v2 = vld [vmem:[%s3516_s15 + $0xe0] ss:$12 sps:$4 sm:$0xff]  }
 0x575   :  { %v2270_v5 = vpop.f32.mrb[7].mxu0  ;;  %v2596_v4 = vld [vmem:[%s3516_s15 + $0xf8] ss:$12 sps:$4 sm:$0xff]  }
 0x576   :  { %v1295_v8 = vadd.f32 %v2268_v3, %v2119_v6  ;;  %v2592_v3 = vld [vmem:[%s3516_s15 + $0x20] ss:$12 sps:$4 sm:$0xff]   ;;  %v2597_v5 = vld [vmem:[%s3516_s15 + $0x38] ss:$12 sps:$4 sm:$0xff]   ;;  %v2601_v6 = vld [vmem:[%s3516_s15 + $0x110] ss:$12 sps:$4 sm:$0xff]  }
 0x580   :  { %v1334_v11 = vpop.f32.mrb[16].mxu1 }
 0x581   :  { %v1335_v13 = vadd.f32 %v1334_v11, %v1295_v8  ;;  %v2358_v14 = vpop.f32.mrb[17].mxu1  ;;  %v2602_v8 = vld [vmem:[%s3516_s15 + $0x50] ss:$12 sps:$4 sm:$0xff]   ;;  %v2606_v11 = vld [vmem:[%s3516_s15 + $0x128] ss:$12 sps:$4 sm:$0xff]  }
 0x582   :  { %v1337_v15 = vpop.f32.mrb[18].mxu1  ;;  %v2611_v14 = vld [vmem:[%s3516_s15 + $0x140] ss:$12 sps:$4 sm:$0xff]  }
 0x583   :  { %vm1340_vm8 = vcmp.gt.f32.partialorder %v1335_v13, 0.0  ;;  %v1341_v16 = vmul.f32 0.1, %v1335_v13  ;;  %v2359_v17 = vpop.f32.mrb[19].mxu1  ;;  %v2612_v15 = vld [vmem:[%s3516_s15 + $0x80] ss:$12 sps:$4 sm:$0xff]  }
 0x584   :  { %v2616_v17 = vld [vmem:[%s3516_s15 + $0x158] ss:$12 sps:$4 sm:$0xff]  }
 0x585   :  { %v1342_v18 = vsel %vm1340_vm8, %v1335_v13, %v1341_v16  ;;  %v2607_v13 = vld [vmem:[%s3516_s15 + $0x68] ss:$12 sps:$4 sm:$0xff]  }
 0x586   :  { %v1343_v19 = vpack.c.bf16 %v1342_v18, %v1342_v18  ;;  %v2615_v16 = vld [vmem:[%s3516_s15 + $0x154] ss:$12 sps:$4 sm:$0xff]   ;;  %v2613_v18 = vld [vmem:[%s3516_s15 + $0x150] ss:$12 sps:$4 sm:$0xff]  }
 0x588   :  { %2369 = vmatmul.mubr.msk.bf16.vlgmr.msra.gmra.mrb[8].mxu0 %vm973_vm7, %v1343_v19  ;;  %v2617_v19 = vld [vmem:[%s3516_s15 + $0x98] ss:$12 sps:$4 sm:$0xff]  }
 0x589   :  { %1925 = vmatpush1.bf16.msra.mxu0 %v2559_v24  ;;  %v1446_v24 = vld [vmem:[#allocation19] sm:$0x3] }
 0x58a   :  { %1926 = vmatprep.subr.bf16.mxu0 %v2564_v26  ;;  %v1451_v25 = vrot.slane %v1446_v24, %v3165_v10  ;;  %v1455_v26 = vrot.slane %v1446_v24, %v3168_v12 }
 0x58d   :  { %1927 = vmatpush1.bf16.msra.mxu0 %v2562_v27 }
 0x58e   :  { %1928 = vmatprep.subr.bf16.mxu0 %v2567_v28 }
 0x591   :  { %1929 = vmatpush1.bf16.msra.mxu0 %v2565_v30 }
 0x592   :  { %1930 = vmatprep.subr.bf16.mxu0 %v2570_v31 }
 0x595   :  { %1931 = vmatpush1.bf16.msra.mxu0 %v2568_v32 }
 0x596   :  { %1932 = vmatprep.subr.bf16.mxu0 %v2573_v33 }
 0x599   :  { %1933 = vmatpush1.bf16.msra.mxu0 %v2571_v34 }
 0x59a   :  { %1934 = vmatprep.subr.bf16.mxu0 %v2576_v36 }
 0x59d   :  { %1935 = vmatpush1.bf16.msra.mxu0 %v2574_v38 }
 0x59e   :  { %1936 = vmatprep.subr.bf16.mxu0 %v2579_v39 }
 0x5a1   :  { %1937 = vmatpush1.bf16.msra.mxu0 %v2577_v40 }
 0x5a2   :  { %1938 = vmatprep.subr.bf16.mxu0 %v2582_v41  ;;  %v1651_v41 = vld [vmem:[%s3517_s16] sm:$0x7]  ;;  %s2921_s16 = smov [#allocation20]  }
 0x5a3   :  { %s2017_s1 = sshll.u32 %s2921_s16, 4  ;;  %s2018_s1 = int_to_ptr.vmem [resolvable:$true] %s2017_s1 }
 0x5a4   :  { %s2865_s27 = scalar_lea.vmem %s2018_s1, 384  ;;  %p2870_p5 = scmp.lt.s32.totalorder %s2018_s1, %s2018_s1 }
 0x5a5   :  { %1939 = vmatpush1.bf16.msra.mxu0 %v2580_v43  ;;  %v1656_v43 = vrot.slane %v1651_v41, %v3165_v10  ;;  %p2866_p4 = scmp.ne.s32.totalorder %s2018_s1, %s2865_s27  ;;  %p2871_p6 = scmp.lt.s32.totalorder %s2865_s27, %s2865_s27 }
 0x5a6   :  { %1940 = vmatprep.subr.bf16.mxu0 %v2585_v44  ;;  %v1660_v44 = vrot.slane %v1651_v41, %v3168_v12 }
 0x5a7   :  { %p2872_p7 = por %p2871_p6, %p2870_p5 }
 0x5a9   :  { %1941 = vmatpush1.bf16.msra.mxu0 %v2583_v46  ;;  %p2873_p8 = pnand %p2872_p7, %p2866_p4 }
 0x5aa   :  { %1942 = vmatprep.subr.bf16.mxu0 %v2590_v47 }
 0x5ad   :  { %1943 = vmatpush1.bf16.msra.mxu0 %v2588_v48  ;;  %v1664_v48 = vrot.slane %v1651_v41, %v904_v42 }
 0x5ae   :  { %1944 = vmatprep.subr.bf16.mxu0 %v2595_v49 }
 0x5b1   :  { %1945 = vmatpush1.bf16.msra.mxu0 %v2593_v50 }
 0x5b2   :  { %1946 = vmatprep.subr.bf16.mxu0 %v2600_v51 }
 0x5b5   :  { %1947 = vmatpush1.bf16.msra.mxu0 %v2598_v52 }
 0x5b6   :  { %1948 = vmatprep.subr.bf16.mxu0 %v2605_v53 }
 0x5b9   :  { %1949 = vmatpush1.bf16.msra.mxu0 %v2603_v54 }
 0x5ba   :  { %1950 = vmatprep.subr.bf16.mxu0 %v2610_v55 }
 0x5bd   :  { %1951 = vmatpush1.bf16.msra.mxu0 %v2608_v56 }
 0x5be   :  { %1952 = vmatprep.subr.bf16.mxu0 %v2615_v16 }
 0x5c1   :  { %1953 = vmatpush1.bf16.msra.mxu0 %v2613_v18 }
 0x5c2   :  { %1954 = vmatprep.subr.bf16.mxu0 %v2620_v20 }
 0x5c5   :  { %1955 = vmatpush1.bf16.msra.mxu0 %v2618_v22 }
 0x65b   :  { %v1420_v58 = vpop.f32.mrb[8].mxu0 }
 0x65c   :  { %v1421_v59 = vadd.f32 %v2144_v57, %v1420_v58  ;;  %v2370_v60 = vpop.f32.mrb[9].mxu0 }
 0x65d   :  { %v1423_v61 = vpop.f32.mrb[10].mxu0 }
 0x65e   :  { %vm1426_vm9 = vcmp.gt.f32.partialorder %v1421_v59, 0.0  ;;  %v1427_v7 = vmul.f32 0.1, %v1421_v59  ;;  %v2371_v62 = vpop.f32.mrb[11].mxu0 }
 0x660   :  { %v1428_v63 = vsel %vm1426_vm9, %v1421_v59, %v1427_v7 }
 0x661   :  { %v1429_v1 = vpack.c.bf16 %v1428_v63, %v1428_v63 }
 0x663   :  { %1571 = vmatmul.mubr.bf16.vlgmr.msra.gmra.mrb[20].mxu1 %v1429_v1 }
 0x664   :  { %2287 = vmatpush3.bf16.msra.mxu1 %v2587_v0 }
 0x665   :  { %2288 = vmatprep.subr.bf16.mxu1 %v2591_v2 }
 0x668   :  { %2289 = vmatpush3.bf16.msra.mxu1 %v2592_v3 }
 0x669   :  { %2290 = vmatprep.subr.bf16.mxu1 %v2596_v4 }
 0x66c   :  { %2291 = vmatpush3.bf16.msra.mxu1 %v2597_v5 }
 0x66d   :  { %2292 = vmatprep.subr.bf16.mxu1 %v2601_v6 }
 0x670   :  { %2293 = vmatpush3.bf16.msra.mxu1 %v2602_v8 }
 0x671   :  { %2294 = vmatprep.subr.bf16.mxu1 %v2606_v11 }
 0x674   :  { %2295 = vmatpush3.bf16.msra.mxu1 %v2607_v13 }
 0x675   :  { %2296 = vmatprep.subr.bf16.mxu1 %v2611_v14 }
 0x678   :  { %2297 = vmatpush3.bf16.msra.mxu1 %v2612_v15 }
 0x679   :  { %2298 = vmatprep.subr.bf16.mxu1 %v2616_v17 }
 0x67c   :  { %2299 = vmatpush3.bf16.msra.mxu1 %v2617_v19 }
 0x67d   :  { %2300 = vmatprep.subr.bf16.mxu1 %v2621_v21 }
 0x680   :  { %2301 = vmatpush3.bf16.msra.mxu1 %v2622_v23 }
 0x736   :  { %v1572_v27 = vpop.f32.mrb[20].mxu1 }
 0x737   :  { %v1573_v28 = vadd.f32 %v1572_v27, %v1451_v25  ;;  %v1574_v29 = vpop.f32.mrb[21].mxu1 }
 0x738   :  { %v1575_v30 = vadd.f32 %v1574_v29, %v1455_v26  ;;  %v1576_v31 = vpop.f32.mrb[22].mxu1 }
 0x739   :  { %vm1579_vm10 = vcmp.gt.f32.partialorder %v1573_v28, 0.0  ;;  %v1581_v32 = vmul.f32 0.1, %v1573_v28  ;;  %v1577_v33 = vpop.f32.mrb[23].mxu1 }
 0x73a   :  { %vm1580_vm11 = vcmp.gt.f32.partialorder %v1575_v30, 0.0  ;;  %v1582_v34 = vmul.f32 0.1, %v1575_v30 }
 0x73b   :  { %v1583_v36 = vsel %vm1579_vm10, %v1573_v28, %v1581_v32 }
 0x73c   :  { %v1584_v38 = vsel %vm1580_vm11, %v1575_v30, %v1582_v34  ;;  %v1585_v40 = vpack.c.bf16 %v1583_v36, %v1583_v36 }
 0x73d   :  { %v1586_v39 = vpack.c.bf16 %v1584_v38, %v1584_v38 }
 0x73f   :  { %1956 = vmatprep.mubr.bf16.mxu0 %v1586_v39  ;;  %1997 = vmatprep.mubr.bf16.mxu1 %v1586_v39 }
 0x740   :  { %1957 = vmatmul.mubr.bf16.vlgmr.msra.gmra.mrb[12].mxu0 %v1585_v40  ;;  %1998 = vmatmul.mubr.bf16.vlgmr.msra.gmra.mrb[24].mxu1 %v1585_v40 }
 0x813   :  { %v1958_v46 = vpop.f32.mrb[12].mxu0  ;;  %v2302_v47 = vpop.f32.mrb[24].mxu1 }
 0x814   :  { %v1959_v49 = vadd.f32 %v1958_v46, %v1656_v43  ;;  %v1960_v50 = vpop.f32.mrb[13].mxu0  ;;  %v2303_v51 = vpop.f32.mrb[25].mxu1 }
 0x815   :  { %v1961_v52 = vadd.f32 %v1960_v50, %v1660_v44  ;;  %v2304_v53 = vadd.f32 %v2303_v51, %v2302_v47  ;;  %v1962_v54 = vpop.f32.mrb[14].mxu0  ;;  %v2305_v55 = vpop.f32.mrb[26].mxu1 }
 0x816   :  { %v2005_v56 = vadd.f32 %v1959_v49, %v3299_v35  ;;  %v1963_v57 = vpop.f32.mrb[15].mxu0  ;;  %v2306_v58 = vpop.f32.mrb[27].mxu1 }
 0x817   :  { %v2006_v10 = vadd.f32 %v1961_v52, %v3301_v37  ;;  %v2000_v12 = vadd.f32 %v2304_v53, %v1664_v48 }
 0x818   :  { %2008 = vst [vmem:[#allocation20] sm:$0xff] %v2005_v56 }
 0x819   :  { %2009 = vst [vmem:[#allocation20 + $0x8] sm:$0xff] %v2006_v10  ;;  %v2007_v9 = vadd.f32 %v2000_v12, %v3312_v45 }
 0x81b   :  { %2010 = vst [vmem:[#allocation20 + $0x10] sm:$0xff] %v2007_v9 }
 0x81c   :  { %2876 = shalt.err (!%p2873_p8)
}
 0x81d   :  { %s2877_s24 = scalar_lea.hbm %s3518_s17, 384 }
 0x81e   :  { %p2878_p9 = scmp.ne.s32.totalorder %s3518_s17, %s2877_s24  ;;  %p2881_p10 = scmp.lt.u32.totalorder %s2877_s24, %s3518_s17 }
 0x820   :  { %p2883_p11 = pnand %p2881_p10, %p2878_p9 }
 0x822   :  { %2886 = shalt.err (!%p2883_p11)
}
 0x823   :  { %2020 = dma.vmem_to_hbm [thread:$0]  %s2018_s1, 384, %s3518_s17, [#allocation4]  }
 0x824   :  { %2899 = dma.done.wait [#allocation4], 384  }
 0x825   :  { %2900 = vsyncadd [#allocation4], 4294966912 }
 0x826   :  { %2024 = vsyncpa [#allocation3], 1 }
 0x827   :  { %2025 = vsyncpa [#allocation6], 1 }
 0x828   :  { %2026 = vsyncpa [#allocation9], 1 }
 0x829   :  { %2027 = vsyncpa [#allocation12], 1 }
 0x82a   :  { %2028 = vsyncpa [#allocation15], 1 }
 0x82b   :  { %2029 = vsyncpa [#allocation18], 1 }
 0x82c   :  { %2030 = vsyncpa [#allocation4], 1 }

</bundles_post_ra>
